<compile_context>
chip_gen: v6e
topology: v6e:2x2x1
jax: 0.10.0
libtpu: 0.0.40
codegen_flags: <defaults>
</compile_context>

<pallas_src>
from functools import partial

import jax
import jax.numpy as jnp
from jax.experimental import pallas as pl
from jax.experimental.pallas import tpu as pltpu


def _encoder_kernel(x_ref, wstem_ref, wlin_ref, params_ref, out_ref,
                    acc_ref, pooled_ref, *, batch, cin, hw_total):
    # x_ref:      [B*Cin, THW]     image tile, spatial positions on the lane axis
    # wstem_ref:  [Cf, Cin]        stand-in trunk 1x1-conv weight (f32, resident)
    # wlin_ref:   [E_pad, Cf]      Linear weight, torch-native [E, Cf] zero-padded
    # params_ref: [E_pad, 3]       col 0 = linear bias, col 1 = BN gamma, col 2 = BN beta
    # out_ref:    [E_pad, B]       transposed embeddings (transposed/sliced outside)
    # acc_ref:    [B, Cf, THW]     f32 per-lane-position running sums (VMEM scratch)
    # pooled_ref: [Cf, B]          f32 pooled features, written only in finalize
    step = pl.program_id(0)

    @pl.when(step == 0)
    def _init():
        acc_ref[...] = jnp.zeros_like(acc_ref)

    x = x_ref[...].astype(jnp.float32)           # [B*Cin, THW]
    wstem = wstem_ref[...].astype(jnp.float32)   # [Cf, Cin]

    # Stand-in trunk (1x1 conv) + ReLU + per-lane-position partial pool.
    # The K=cin contraction is `cin` VPU broadcast-FMAs over the lane-dense
    # spatial axis; only a [Cf, THW] slab per batch element exists at a time.
    # Accumulation is a full-slab VPU add (no cross-lane reduce in the hot loop).
    for b in range(batch):                       # static unroll, batch is small
        base = b * cin
        feat = wstem[:, 0:1] * x[base:base + 1, :]               # [Cf, THW]
        for c in range(1, cin):                  # static unroll, cin = 3
            feat = feat + wstem[:, c:c + 1] * x[base + c:base + c + 1, :]
        feat = jnp.maximum(feat, 0.0)            # ReLU
        acc_ref[b] += feat                       # vreg-aligned accumulate

    @pl.when(step == pl.num_programs(0) - 1)
    def _finalize():
        # Global avg-pool (single XLU reduce per batch element) -> Linear ->
        # BatchNorm1d (training-mode batch stats, biased variance, eps=1e-5).
        # Runs once, in [feature, batch] orientation so no in-kernel
        # transposes are needed.  Kept f32 (tiny).
        inv_hw = 1.0 / hw_total
        for b in range(batch):
            pooled_ref[:, b:b + 1] = (
                jnp.sum(acc_ref[b], axis=1, keepdims=True) * inv_hw)
        lin_t = jnp.dot(wlin_ref[...], pooled_ref[...],
                        preferred_element_type=jnp.float32)       # [E_pad, B]
        lin_t = lin_t + params_ref[:, 0:1]                        # + linear bias
        mu = jnp.mean(lin_t, axis=1, keepdims=True)               # [E_pad, 1]
        ctr = lin_t - mu
        var = jnp.mean(ctr * ctr, axis=1, keepdims=True)
        xhat = ctr * jax.lax.rsqrt(var + 1e-5)
        out_ref[...] = (params_ref[:, 1:2] * xhat
                        + params_ref[:, 2:3]).astype(out_ref.dtype)


def _pick_tile_hw(hw, max_tile):
    """Largest lane-dense (multiple-of-128) tile <= max_tile that divides HW."""
    if hw % 128 != 0:
        return hw                                 # single full-extent tile
    t = min(max_tile - max_tile % 128, hw)
    t = max(t, 128)
    while hw % t:
        t -= 128
    return t


def encoder_forward(images_nchw, wstem, wlin, blin, gamma, beta,
                    *, max_tile_hw=2048):
    """images_nchw: [B, Cin, H, W] (f32 or bf16).
    wstem: [Cf, Cin] stand-in trunk weight.  wlin: torch-native [E, Cf].
    blin/gamma/beta: [E] linear bias / BN weight / BN bias."""
    B, Cin, H, W = images_nchw.shape
    Cf = wstem.shape[0]
    E = wlin.shape[0]
    HW = H * W
    tile_hw = _pick_tile_hw(HW, max_tile_hw)
    assert HW % tile_hw == 0
    n_tiles = HW // tile_hw
    E_pad = max(128, ((E + 127) // 128) * 128)

    # NCHW -> [B*Cin, HW]: pure reshape (no transpose, no extra HBM pass);
    # spatial positions land on the 128-lane axis so x tiles are lane-dense.
    x2d = images_nchw.reshape(B * Cin, HW)

    # Pad the embed axis to a lane-dense multiple of 128 and pack the three
    # per-feature parameter vectors into a single resident block.
    wlin_pad = jnp.zeros((E_pad, Cf), jnp.float32).at[:E, :].set(
        wlin.astype(jnp.float32))
    params = jnp.zeros((E_pad, 3), jnp.float32)
    params = params.at[:E, 0].set(blin).at[:E, 1].set(gamma).at[:E, 2].set(beta)

    kernel = partial(_encoder_kernel, batch=B, cin=Cin, hw_total=HW)

    out_t = pl.pallas_call(
        kernel,
        out_shape=jax.ShapeDtypeStruct((E_pad, B), jnp.float32),
        grid_spec=pltpu.PrefetchScalarGridSpec(
            num_scalar_prefetch=0,
            grid=(n_tiles,),
            in_specs=[
                pl.BlockSpec((B * Cin, tile_hw), lambda i: (0, i)),  # pipelined x
                pl.BlockSpec((Cf, Cin), lambda i: (0, 0)),           # resident
                pl.BlockSpec((E_pad, Cf), lambda i: (0, 0)),         # resident
                pl.BlockSpec((E_pad, 3), lambda i: (0, 0)),          # resident
            ],
            out_specs=pl.BlockSpec((E_pad, B), lambda i: (0, 0)),
            scratch_shapes=[
                pltpu.VMEM((B, Cf, tile_hw), jnp.float32),   # per-lane pool sums
                pltpu.VMEM((Cf, B), jnp.float32),            # pooled features
            ],
        ),
        compiler_params=pltpu.CompilerParams(
            dimension_semantics=("arbitrary",)),   # reduction axis (accumulator)
    )(x2d, wstem.astype(jnp.float32), wlin_pad, params)

    # [E_pad, B] -> [B, E]; trivial epilogue transpose/slice of E_pad*B elems.
    return out_t.T[:, :E]


def reference_forward(images_nchw, wstem, wlin, blin, gamma, beta):
    B, Cin, H, W = images_nchw.shape
    x = images_nchw.astype(jnp.float32).reshape(B, Cin, H * W)
    feat = jnp.maximum(
        jnp.einsum("fc,bcp->bfp", wstem, x,
                   precision=jax.lax.Precision.HIGHEST), 0.0)
    pooled = jnp.mean(feat, axis=2)                               # [B, Cf]
    lin = jnp.dot(pooled, wlin.T,
                  precision=jax.lax.Precision.HIGHEST) + blin     # [B, E]
    mu = jnp.mean(lin, axis=0, keepdims=True)
    var = jnp.mean((lin - mu) ** 2, axis=0, keepdims=True)
    return gamma * ((lin - mu) / jnp.sqrt(var + 1e-5)) + beta


if __name__ == "__main__":
    B, Cin, H, W = 2, 3, 16, 16     # small NCHW image batch (like PyTorch)
    Cf = 128                        # stand-in for resnet.fc.in_features (=2048)
    E = 32                          # embed_size

    key = jax.random.PRNGKey(0)
    k_img, k_stem, k_lin, k_bias, k_g, k_b = jax.random.split(key, 6)

    # Images arrive in bf16 (halves the dominant x DMA bytes into the kernel);
    # all in-kernel math runs in f32 with an f32 pooled accumulator.
    images = jax.random.normal(
        k_img, (B, Cin, H, W), dtype=jnp.float32).astype(jnp.bfloat16)
    wstem = jax.random.normal(k_stem, (Cf, Cin), dtype=jnp.float32) * 0.1
    wlin = jax.random.normal(k_lin, (E, Cf), dtype=jnp.float32) * 0.05  # [E, Cf]
    blin = jax.random.normal(k_bias, (E,), dtype=jnp.float32) * 0.01
    gamma = 1.0 + 0.01 * jax.random.normal(k_g, (E,), dtype=jnp.float32)
    beta = 0.01 * jax.random.normal(k_b, (E,), dtype=jnp.float32)

    # max_tile_hw=128 -> 2 grid steps at this demo size, so the multi-step
    # accumulation / finalize path is exercised.
    out = encoder_forward(images, wstem, wlin, blin, gamma, beta,
                          max_tile_hw=128)
    out = jax.block_until_ready(out)

    ref = reference_forward(images, wstem, wlin, blin, gamma, beta)
    assert out.shape == (B, E)
    assert jnp.allclose(out, ref, atol=2e-3, rtol=2e-3), "mismatch vs reference"

    print("KERNEL_OK")
</pallas_src>

<mosaic_0001>
module attributes {stable_mosaic.version = 11 : i64} {
  func.func @_encoder_kernel(%arg0: i32, %arg1: memref<6x128xbf16, #tpu.memory_space<vmem>>, %arg2: memref<128x3xf32, #tpu.memory_space<vmem>>, %arg3: memref<128x128xf32, #tpu.memory_space<vmem>>, %arg4: memref<128x3xf32, #tpu.memory_space<vmem>>, %arg5: memref<128x2xf32, #tpu.memory_space<vmem>>, %arg6: memref<2x128x128xf32, #tpu.memory_space<vmem>>, %arg7: memref<128x2xf32, #tpu.memory_space<vmem>>) attributes {dimension_semantics = [#tpu.dimension_semantics<arbitrary>], iteration_bounds = array<i64: 2>, scalar_prefetch = 0 : i64, scratch_operands = 2 : i64, tpu.core_type = #tpu.core_type<tc>, window_params = [{transform_indices = @transform_0, window_bounds = array<i64: 6, 128>}, {pipeline_mode = #tpu.pipeline_mode<synchronous>, transform_indices = @transform_1, window_bounds = array<i64: 128, 3>}, {pipeline_mode = #tpu.pipeline_mode<synchronous>, transform_indices = @transform_2, window_bounds = array<i64: 128, 128>}, {pipeline_mode = #tpu.pipeline_mode<synchronous>, transform_indices = @transform_3, window_bounds = array<i64: 128, 3>}, {pipeline_mode = #tpu.pipeline_mode<synchronous>, transform_indices = @transform_4, window_bounds = array<i64: 128, 2>}]} {
    %c0_i32 = arith.constant 0 : i32
    %0 = arith.cmpi eq, %arg0, %c0_i32 : i32
    %1 = arith.extui %0 : i1 to i32
    %c0_i32_0 = arith.constant 0 : i32
    %2 = arith.cmpi ne, %1, %c0_i32_0 : i32
    scf.if %2 {
      %cst_17 = arith.constant 0.000000e+00 : f32
      %59 = vector.broadcast %cst_17 : f32 to vector<2x128x128xf32>
      %c0_18 = arith.constant 0 : index
      %c0_19 = arith.constant 0 : index
      %c0_20 = arith.constant 0 : index
      %60 = vector.load %arg6[%c0_18, %c0_19, %c0_20] : memref<2x128x128xf32, #tpu.memory_space<vmem>>, vector<2x128x128xf32>
      tpu.vector_store %arg6[%c0_18, %c0_19, %c0_20], %59 {strides = array<i32>} : memref<2x128x128xf32, #tpu.memory_space<vmem>>, vector<2x128x128xf32>,
    } else {
    }
    %c0 = arith.constant 0 : index
    %c0_1 = arith.constant 0 : index
    %3 = vector.load %arg1[%c0, %c0_1] : memref<6x128xbf16, #tpu.memory_space<vmem>>, vector<6x128xbf16>
    %4 = arith.extf %3 : vector<6x128xbf16> to vector<6x128xf32>
    %c0_2 = arith.constant 0 : index
    %c0_3 = arith.constant 0 : index
    %5 = vector.load %arg2[%c0_2, %c0_3] : memref<128x3xf32, #tpu.memory_space<vmem>>, vector<128x3xf32>
    %6 = vector.extract_strided_slice %5 {offsets = [0, 0], sizes = [128, 1], strides = [1, 1]} : vector<128x3xf32> to vector<128x1xf32>
    %7 = vector.extract_strided_slice %4 {offsets = [0, 0], sizes = [1, 128], strides = [1, 1]} : vector<6x128xf32> to vector<1x128xf32>
    %8 = vector.broadcast %6 : vector<128x1xf32> to vector<128x128xf32>
    %9 = vector.broadcast %7 : vector<1x128xf32> to vector<128x128xf32>
    %10 = arith.mulf %8, %9 : vector<128x128xf32>
    %11 = vector.extract_strided_slice %5 {offsets = [0, 1], sizes = [128, 1], strides = [1, 1]} : vector<128x3xf32> to vector<128x1xf32>
    %12 = vector.extract_strided_slice %4 {offsets = [1, 0], sizes = [1, 128], strides = [1, 1]} : vector<6x128xf32> to vector<1x128xf32>
    %13 = vector.broadcast %11 : vector<128x1xf32> to vector<128x128xf32>
    %14 = vector.broadcast %12 : vector<1x128xf32> to vector<128x128xf32>
    %15 = arith.mulf %13, %14 : vector<128x128xf32>
    %16 = arith.addf %10, %15 : vector<128x128xf32>
    %17 = vector.extract_strided_slice %5 {offsets = [0, 2], sizes = [128, 1], strides = [1, 1]} : vector<128x3xf32> to vector<128x1xf32>
    %18 = vector.extract_strided_slice %4 {offsets = [2, 0], sizes = [1, 128], strides = [1, 1]} : vector<6x128xf32> to vector<1x128xf32>
    %19 = vector.broadcast %17 : vector<128x1xf32> to vector<128x128xf32>
    %20 = vector.broadcast %18 : vector<1x128xf32> to vector<128x128xf32>
    %21 = arith.mulf %19, %20 : vector<128x128xf32>
    %22 = arith.addf %16, %21 : vector<128x128xf32>
    %cst = arith.constant 0.000000e+00 : f32
    %23 = vector.broadcast %cst : f32 to vector<128x128xf32>
    %24 = arith.maximumf %22, %23 : vector<128x128xf32>
    %c0_4 = arith.constant 0 : index
    %c0_5 = arith.constant 0 : index
    %c0_6 = arith.constant 0 : index
    %25 = vector.load %arg6[%c0_4, %c0_5, %c0_6] : memref<2x128x128xf32, #tpu.memory_space<vmem>>, vector<1x128x128xf32>
    %26 = vector.shape_cast %25 : vector<1x128x128xf32> to vector<128x128xf32>
    %27 = arith.addf %26, %24 : vector<128x128xf32>
    %c0_7 = arith.constant 0 : index
    %c0_8 = arith.constant 0 : index
    %c0_9 = arith.constant 0 : index
    %28 = vector.load %arg6[%c0_7, %c0_8, %c0_9] : memref<2x128x128xf32, #tpu.memory_space<vmem>>, vector<1x128x128xf32>
    %29 = vector.shape_cast %28 : vector<1x128x128xf32> to vector<128x128xf32>
    %30 = vector.shape_cast %27 : vector<128x128xf32> to vector<1x128x128xf32>
    tpu.vector_store %arg6[%c0_7, %c0_8, %c0_9], %30 {strides = array<i32>} : memref<2x128x128xf32, #tpu.memory_space<vmem>>, vector<1x128x128xf32>,
    %31 = vector.extract_strided_slice %5 {offsets = [0, 0], sizes = [128, 1], strides = [1, 1]} : vector<128x3xf32> to vector<128x1xf32>
    %32 = vector.extract_strided_slice %4 {offsets = [3, 0], sizes = [1, 128], strides = [1, 1]} : vector<6x128xf32> to vector<1x128xf32>
    %33 = vector.broadcast %31 : vector<128x1xf32> to vector<128x128xf32>
    %34 = vector.broadcast %32 : vector<1x128xf32> to vector<128x128xf32>
    %35 = arith.mulf %33, %34 : vector<128x128xf32>
    %36 = vector.extract_strided_slice %5 {offsets = [0, 1], sizes = [128, 1], strides = [1, 1]} : vector<128x3xf32> to vector<128x1xf32>
    %37 = vector.extract_strided_slice %4 {offsets = [4, 0], sizes = [1, 128], strides = [1, 1]} : vector<6x128xf32> to vector<1x128xf32>
    %38 = vector.broadcast %36 : vector<128x1xf32> to vector<128x128xf32>
    %39 = vector.broadcast %37 : vector<1x128xf32> to vector<128x128xf32>
    %40 = arith.mulf %38, %39 : vector<128x128xf32>
    %41 = arith.addf %35, %40 : vector<128x128xf32>
    %42 = vector.extract_strided_slice %5 {offsets = [0, 2], sizes = [128, 1], strides = [1, 1]} : vector<128x3xf32> to vector<128x1xf32>
    %43 = vector.extract_strided_slice %4 {offsets = [5, 0], sizes = [1, 128], strides = [1, 1]} : vector<6x128xf32> to vector<1x128xf32>
    %44 = vector.broadcast %42 : vector<128x1xf32> to vector<128x128xf32>
    %45 = vector.broadcast %43 : vector<1x128xf32> to vector<128x128xf32>
    %46 = arith.mulf %44, %45 : vector<128x128xf32>
    %47 = arith.addf %41, %46 : vector<128x128xf32>
    %cst_10 = arith.constant 0.000000e+00 : f32
    %48 = vector.broadcast %cst_10 : f32 to vector<128x128xf32>
    %49 = arith.maximumf %47, %48 : vector<128x128xf32>
    %c1 = arith.constant 1 : index
    %c0_11 = arith.constant 0 : index
    %c0_12 = arith.constant 0 : index
    %50 = vector.load %arg6[%c1, %c0_11, %c0_12] : memref<2x128x128xf32, #tpu.memory_space<vmem>>, vector<1x128x128xf32>
    %51 = vector.shape_cast %50 : vector<1x128x128xf32> to vector<128x128xf32>
    %52 = arith.addf %51, %49 : vector<128x128xf32>
    %c1_13 = arith.constant 1 : index
    %c0_14 = arith.constant 0 : index
    %c0_15 = arith.constant 0 : index
    %53 = vector.load %arg6[%c1_13, %c0_14, %c0_15] : memref<2x128x128xf32, #tpu.memory_space<vmem>>, vector<1x128x128xf32>
    %54 = vector.shape_cast %53 : vector<1x128x128xf32> to vector<128x128xf32>
    %55 = vector.shape_cast %52 : vector<128x128xf32> to vector<1x128x128xf32>
    tpu.vector_store %arg6[%c1_13, %c0_14, %c0_15], %55 {strides = array<i32>} : memref<2x128x128xf32, #tpu.memory_space<vmem>>, vector<1x128x128xf32>,
    %c1_i32 = arith.constant 1 : i32
    %56 = arith.cmpi eq, %arg0, %c1_i32 : i32
    %57 = arith.extui %56 : i1 to i32
    %c0_i32_16 = arith.constant 0 : i32
    %58 = arith.cmpi ne, %57, %c0_i32_16 : i32
    scf.if %58 {
      %c0_17 = arith.constant 0 : index
      %c0_18 = arith.constant 0 : index
      %c0_19 = arith.constant 0 : index
      %59 = vector.load %arg6[%c0_17, %c0_18, %c0_19] : memref<2x128x128xf32, #tpu.memory_space<vmem>>, vector<1x128x128xf32>
      %60 = vector.shape_cast %59 : vector<1x128x128xf32> to vector<128x128xf32>
      %cst_20 = arith.constant dense<0.000000e+00> : vector<128xf32>
      %61 = vector.multi_reduction <add>, %60, %cst_20 [1] : vector<128x128xf32> to vector<128xf32>
      %62 = vector.shape_cast %61 : vector<128xf32> to vector<128x1xf32>
      %cst_21 = arith.constant 3.906250e-03 : f32
      %63 = vector.broadcast %cst_21 : f32 to vector<128x1xf32>
      %64 = arith.mulf %62, %63 : vector<128x1xf32>
      %c0_22 = arith.constant 0 : index
      %c0_23 = arith.constant 0 : index
      %65 = vector.load %arg7[%c0_22, %c0_23] : memref<128x2xf32, #tpu.memory_space<vmem>>, vector<128x1xf32>
      tpu.vector_store %arg7[%c0_22, %c0_23], %64 {strides = array<i32>} : memref<128x2xf32, #tpu.memory_space<vmem>>, vector<128x1xf32>,
      %c1_24 = arith.constant 1 : index
      %c0_25 = arith.constant 0 : index
      %c0_26 = arith.constant 0 : index
      %66 = vector.load %arg6[%c1_24, %c0_25, %c0_26] : memref<2x128x128xf32, #tpu.memory_space<vmem>>, vector<1x128x128xf32>
      %67 = vector.shape_cast %66 : vector<1x128x128xf32> to vector<128x128xf32>
      %cst_27 = arith.constant dense<0.000000e+00> : vector<128xf32>
      %68 = vector.multi_reduction <add>, %67, %cst_27 [1] : vector<128x128xf32> to vector<128xf32>
      %69 = vector.shape_cast %68 : vector<128xf32> to vector<128x1xf32>
      %cst_28 = arith.constant 3.906250e-03 : f32
      %70 = vector.broadcast %cst_28 : f32 to vector<128x1xf32>
      %71 = arith.mulf %69, %70 : vector<128x1xf32>
      %c0_29 = arith.constant 0 : index
      %c1_30 = arith.constant 1 : index
      %72 = vector.load %arg7[%c0_29, %c1_30] : memref<128x2xf32, #tpu.memory_space<vmem>>, vector<128x1xf32>
      tpu.vector_store %arg7[%c0_29, %c1_30], %71 {strides = array<i32>} : memref<128x2xf32, #tpu.memory_space<vmem>>, vector<128x1xf32>,
      %c0_31 = arith.constant 0 : index
      %c0_32 = arith.constant 0 : index
      %73 = vector.load %arg3[%c0_31, %c0_32] : memref<128x128xf32, #tpu.memory_space<vmem>>, vector<128x128xf32>
      %c0_33 = arith.constant 0 : index
      %c0_34 = arith.constant 0 : index
      %74 = vector.load %arg7[%c0_33, %c0_34] : memref<128x2xf32, #tpu.memory_space<vmem>>, vector<128x2xf32>
      %cst_35 = arith.constant dense<0.000000e+00> : vector<128x2xf32>
      %75 = tpu.matmul %73, %74, %cst_35 {dimension_numbers = #tpu.dot_dimension_numbers<[1], [0], [0], [1], [0, 0, 1, 1], [], []>} : vector<128x128xf32>, vector<128x2xf32>, vector<128x2xf32> -> vector<128x2xf32>
      %c0_36 = arith.constant 0 : index
      %c0_37 = arith.constant 0 : index
      %76 = vector.load %arg4[%c0_36, %c0_37] : memref<128x3xf32, #tpu.memory_space<vmem>>, vector<128x1xf32>
      %77 = vector.broadcast %76 : vector<128x1xf32> to vector<128x2xf32>
      %78 = arith.addf %75, %77 : vector<128x2xf32>
      %cst_38 = arith.constant dense<0.000000e+00> : vector<128xf32>
      %79 = vector.multi_reduction <add>, %78, %cst_38 [1] : vector<128x2xf32> to vector<128xf32>
      %80 = vector.shape_cast %79 : vector<128xf32> to vector<128x1xf32>
      %cst_39 = arith.constant 2.000000e+00 : f32
      %81 = vector.broadcast %cst_39 : f32 to vector<128x1xf32>
      %82 = arith.divf %80, %81 : vector<128x1xf32>
      %83 = vector.broadcast %82 : vector<128x1xf32> to vector<128x2xf32>
      %84 = arith.subf %78, %83 : vector<128x2xf32>
      %85 = arith.mulf %84, %84 : vector<128x2xf32>
      %cst_40 = arith.constant dense<0.000000e+00> : vector<128xf32>
      %86 = vector.multi_reduction <add>, %85, %cst_40 [1] : vector<128x2xf32> to vector<128xf32>
      %87 = vector.shape_cast %86 : vector<128xf32> to vector<128x1xf32>
      %cst_41 = arith.constant 2.000000e+00 : f32
      %88 = vector.broadcast %cst_41 : f32 to vector<128x1xf32>
      %89 = arith.divf %87, %88 : vector<128x1xf32>
      %cst_42 = arith.constant 9.99999974E-6 : f32
      %90 = vector.broadcast %cst_42 : f32 to vector<128x1xf32>
      %91 = arith.addf %89, %90 : vector<128x1xf32>
      %92 = math.rsqrt %91 : vector<128x1xf32>
      %93 = vector.broadcast %92 : vector<128x1xf32> to vector<128x2xf32>
      %94 = arith.mulf %84, %93 : vector<128x2xf32>
      %c0_43 = arith.constant 0 : index
      %c1_44 = arith.constant 1 : index
      %95 = vector.load %arg4[%c0_43, %c1_44] : memref<128x3xf32, #tpu.memory_space<vmem>>, vector<128x1xf32>
      %96 = vector.broadcast %95 : vector<128x1xf32> to vector<128x2xf32>
      %97 = arith.mulf %96, %94 : vector<128x2xf32>
      %c0_45 = arith.constant 0 : index
      %c2 = arith.constant 2 : index
      %98 = vector.load %arg4[%c0_45, %c2] : memref<128x3xf32, #tpu.memory_space<vmem>>, vector<128x1xf32>
      %99 = vector.broadcast %98 : vector<128x1xf32> to vector<128x2xf32>
      %100 = arith.addf %97, %99 : vector<128x2xf32>
      %c0_46 = arith.constant 0 : index
      %c0_47 = arith.constant 0 : index
      %101 = vector.load %arg5[%c0_46, %c0_47] : memref<128x2xf32, #tpu.memory_space<vmem>>, vector<128x2xf32>
      tpu.vector_store %arg5[%c0_46, %c0_47], %100 {strides = array<i32>} : memref<128x2xf32, #tpu.memory_space<vmem>>, vector<128x2xf32>,
    } else {
    }
    return
  }
  func.func @transform_0(%arg0: i32) -> (i32, i32) {
    %c0_i32 = arith.constant 0 : i32
    %c0_i32_0 = arith.constant 0 : i32
    return %c0_i32, %arg0 : i32, i32
  }
  func.func @transform_1(%arg0: i32) -> (i32, i32) {
    %c0_i32 = arith.constant 0 : i32
    %c0_i32_0 = arith.constant 0 : i32
    %c0_i32_1 = arith.constant 0 : i32
    return %c0_i32, %c0_i32_0 : i32, i32
  }
  func.func @transform_2(%arg0: i32) -> (i32, i32) {
    %c0_i32 = arith.constant 0 : i32
    %c0_i32_0 = arith.constant 0 : i32
    %c0_i32_1 = arith.constant 0 : i32
    return %c0_i32, %c0_i32_0 : i32, i32
  }
  func.func @transform_3(%arg0: i32) -> (i32, i32) {
    %c0_i32 = arith.constant 0 : i32
    %c0_i32_0 = arith.constant 0 : i32
    %c0_i32_1 = arith.constant 0 : i32
    return %c0_i32, %c0_i32_0 : i32, i32
  }
  func.func @transform_4(%arg0: i32) -> (i32, i32) {
    %c0_i32 = arith.constant 0 : i32
    %c0_i32_0 = arith.constant 0 : i32
    %c0_i32_1 = arith.constant 0 : i32
    return %c0_i32, %c0_i32_0 : i32, i32
  }
}

</mosaic_0001>

<bundles_post_ra>
// kernel: tpu_custom_call.1
= control target key start
LH: loop header
LB: loop body
LE: loop exit
PB: predicated region body
PF: predicated region fallthrough
CT: control target
= control target key end

     0   :  { %s1836_s15 = smov 0   ;;  %s2659_s0 = inlined_call_operand.vmem [shape: bf16[6,256], index: 0, kind: input, shape index: {}]   ;;  %s2660_s1 = inlined_call_operand.vmem [shape: f32[128,3], index: 1, kind: input, shape index: {}]   ;;  %s2661_s2 = inlined_call_operand.vmem [shape: f32[128,128], index: 2, kind: input, shape index: {}]   ;;  %s2662_s3 = inlined_call_operand.vmem [shape: f32[128,3], index: 3, kind: input, shape index: {}]   ;;  %s2663_s4 = inlined_call_operand.vmem [shape: f32[128,2], index: 4, kind: output, shape index: {}]  }
   0x1 LB: > { %s1842_s16 = sadd.s32 4294967295, %s1802_s15   ;;  %p1611_p0 = scmp.ge.s32.totalorder %s1802_s15, 1  ;;  %s1802_s15 = sphi %s1836_s15, %s14_s15  }
   0x2   : > { %p156_p1 = scmp.lt.s32.totalorder %s1802_s15, 3 }
   0x4   : > { %p157_p2 = pnand %p1611_p0, %p156_p1 }
   0x6   : > { %160 = sbr.rel (%p157_p2) target bundleno = 1024 (0x400), region = 36 }
   0xb   : > { %p176_p3 = scmp.lt.s32.totalorder %s1842_s16, 1  ;;  %p1613_p4 = scmp.ne.s32.totalorder %s1842_s16, 0 }
   0xd   : > { %s177_s17 = scalar_select %p176_p3, %s1842_s16, 1 }
   0xe   : > { %183 = sbr.rel (%p1613_p4) target bundleno = 36 (0x24), region = 40 }
   0xf   : > { %s1612_s18 = sshll.u32 %s177_s17, 2 }
  0x10   : > { %s1851_s21 = scalar_lea.vmem %s2659_s0, %s1612_s18 }
  0x13   : > { %v1804_v0 = vmov 0.0  }
  0x14   : > { %184 = vst [vmem:[#allocation2 + $0xb0] sm:$0xff] %v1804_v0  ;;  %185 = vst [vmem:[#allocation2] sm:$0xff] %v1804_v0 }
  0x15   : > { %186 = vst [vmem:[#allocation2 + $0xd8] sm:$0xff] %v1804_v0  ;;  %187 = vst [vmem:[#allocation2 + $0x18] sm:$0xff] %v1804_v0 }
  0x16   : > { %188 = vst [vmem:[#allocation2 + $0x50] sm:$0xff] %v1804_v0  ;;  %189 = vst [vmem:[#allocation2 + $0x68] sm:$0xff] %v1804_v0 }
  0x17   : > { %190 = vst [vmem:[#allocation2 + $0x30] sm:$0xff] %v1804_v0  ;;  %191 = vst [vmem:[#allocation2 + $0x48] sm:$0xff] %v1804_v0 }
  0x18   : > { %192 = vst [vmem:[#allocation2 + $0x80] sm:$0xff] %v1804_v0  ;;  %193 = vst [vmem:[#allocation2 + $0x88] sm:$0xff] %v1804_v0 }
  0x19   : > { %194 = vst [vmem:[#allocation2 + $0xe8] sm:$0xff] %v1804_v0  ;;  %195 = vst [vmem:[#allocation2 + $0xb8] sm:$0xff] %v1804_v0 }
  0x1a   : > { %196 = vst [vmem:[#allocation2 + $0x60] sm:$0xff] %v1804_v0  ;;  %197 = vst [vmem:[#allocation2 + $0xf0] sm:$0xff] %v1804_v0 }
  0x1b   : > { %198 = vst [vmem:[#allocation2 + $0x8] sm:$0xff] %v1804_v0  ;;  %199 = vst [vmem:[#allocation2 + $0x78] sm:$0xff] %v1804_v0 }
  0x1c   : > { %200 = vst [vmem:[#allocation2 + $0x38] sm:$0xff] %v1804_v0  ;;  %201 = vst [vmem:[#allocation2 + $0x58] sm:$0xff] %v1804_v0 }
  0x1d   : > { %202 = vst [vmem:[#allocation2 + $0x40] sm:$0xff] %v1804_v0  ;;  %203 = vst [vmem:[#allocation2 + $0xc8] sm:$0xff] %v1804_v0 }
  0x1e   : > { %204 = vst [vmem:[#allocation2 + $0xe0] sm:$0xff] %v1804_v0  ;;  %205 = vst [vmem:[#allocation2 + $0x90] sm:$0xff] %v1804_v0 }
  0x1f   : > { %206 = vst [vmem:[#allocation2 + $0x70] sm:$0xff] %v1804_v0  ;;  %207 = vst [vmem:[#allocation2 + $0xc0] sm:$0xff] %v1804_v0 }
  0x20   : > { %208 = vst [vmem:[#allocation2 + $0xa8] sm:$0xff] %v1804_v0  ;;  %209 = vst [vmem:[#allocation2 + $0xd0] sm:$0xff] %v1804_v0 }
  0x21   : > { %210 = vst [vmem:[#allocation2 + $0x10] sm:$0xff] %v1804_v0  ;;  %211 = vst [vmem:[#allocation2 + $0x28] sm:$0xff] %v1804_v0 }
  0x22   : > { %212 = vst [vmem:[#allocation2 + $0xa0] sm:$0xff] %v1804_v0  ;;  %213 = vst [vmem:[#allocation2 + $0xf8] sm:$0xff] %v1804_v0 }
  0x23   : > { %214 = vst [vmem:[#allocation2 + $0x20] sm:$0xff] %v1804_v0  ;;  %215 = vst [vmem:[#allocation2 + $0x98] sm:$0xff] %v1804_v0 }
  0x24 PF: > { %v220_v1 = vld [vmem:[%s2660_s1 + $0x10] sm:$0xff]  ;;  %v218_v2 = vld [vmem:[%s2660_s1] sm:$0xff]  ;;  %v1805_v3 = vmov 0   ;;  %v221_v4 = vld [vmem:[%s2660_s1 + $0x18] sm:$0xff]  ;;  %v1806_v18 = vmov 1   ;;  %v1807_v19 = vmov 2   ;;  %v314_v36 = vlaneseq }
  0x25   : > { %1753 = vset.pattern.permute.xlu1 %v1805_v3  ;;  %1752 = vset.pattern.permute.xlu0 %v1805_v3  ;;  %v219_v5 = vld [vmem:[%s2660_s1 + $0x8] sm:$0xff]  ;;  %v222_v7 = vld [vmem:[%s2660_s1 + $0x20] sm:$0xff]  ;;  %v225_v8 = vld [vmem:[%s2660_s1 + $0x38] sm:$0xff]  ;;  %p1614_p5 = scmp.ne.s32.totalorder %s1842_s16, 1 }
  0x26   : > { %246 = vperm.xlu1 %1753, %v220_v1   ;;  %236 = vperm.xlu0 %1752, %v218_v2   ;;  %v223_v6 = vld [vmem:[%s2660_s1 + $0x28] sm:$0xff]  ;;  %v224_v9 = vld [vmem:[%s2660_s1 + $0x30] sm:$0xff]  ;;  %v226_v11 = vld [vmem:[%s2660_s1 + $0x40] sm:$0xff]  ;;  %v315_v39 = vshrl.u32 %v314_v36, 7 }
  0x27   : > { %v227_v10 = vld [vmem:[%s2660_s1 + $0x48] sm:$0xff]  ;;  %v229_v12 = vld [vmem:[%s2660_s1 + $0x58] sm:$0xff]  ;;  %v228_v13 = vld [vmem:[%s2660_s1 + $0x50] sm:$0xff] }
  0x28   : > { %v231_v14 = vld [vmem:[%s2660_s1 + $0x68] sm:$0xff]  ;;  %v230_v15 = vld [vmem:[%s2660_s1 + $0x60] sm:$0xff]  ;;  %v233_v16 = vld [vmem:[%s2660_s1 + $0x78] sm:$0xff]  ;;  %v316_v43 = vsub.s32 0, %v315_v39  ;;  %v600_v44 = vsub.s32 3, %v315_v39  ;;  %v400_v46 = vsub.s32 1, %v315_v39 }
  0x29   : > { %v232_v17 = vld [vmem:[%s2660_s1 + $0x70] sm:$0xff]  ;;  %v216_v40 = vld [vmem:[%s1851_s21] sm:$0x7]  ;;  %v620_v47 = vsub.s32 4, %v315_v39  ;;  %v500_v50 = vsub.s32 2, %v315_v39  ;;  %v656_v51 = vsub.s32 5, %v315_v39 }
  0x2a   : > { %251 = vperm.xlu1 %1753, %v221_v4   ;;  %241 = vperm.xlu0 %1752, %v219_v5   ;;  %v217_v45 = vunpack.c.l.bf16 %v216_v40 }
  0x2c   : > { %v317_v52 = vrot.slane %v217_v45, %v316_v43  ;;  %v601_v53 = vrot.slane %v217_v45, %v600_v44  ;;  %v1911_v54 = vrot.slane %v217_v45, %v400_v46  ;;  %v1913_v55 = vrot.slane %v217_v45, %v620_v47 }
  0x2d   : > { %v1919_v58 = vrot.slane %v217_v45, %v500_v50  ;;  %v1921_v59 = vrot.slane %v217_v45, %v656_v51 }
  0x2e   : > { %261 = vperm.xlu1 %1753, %v223_v6   ;;  %256 = vperm.xlu0 %1752, %v222_v7  }
  0x32   : > { %271 = vperm.xlu1 %1753, %v225_v8   ;;  %266 = vperm.xlu0 %1752, %v224_v9  }
  0x36   : > { %281 = vperm.xlu1 %1753, %v227_v10   ;;  %276 = vperm.xlu0 %1752, %v226_v11  }
  0x3a   : > { %291 = vperm.xlu1 %1753, %v229_v12   ;;  %286 = vperm.xlu0 %1752, %v228_v13  }
  0x3e   : > { %301 = vperm.xlu1 %1753, %v231_v14   ;;  %296 = vperm.xlu0 %1752, %v230_v15  }
  0x42   : > { %311 = vperm.xlu1 %1753, %v233_v16   ;;  %306 = vperm.xlu0 %1752, %v232_v17  }
  0x46   : > { %1755 = vset.pattern.permute.xlu1 %v1806_v18  ;;  %1754 = vset.pattern.permute.xlu0 %v1806_v18 }
  0x47   : > { %339 = vperm.xlu1 %1755, %v219_v5   ;;  %335 = vperm.xlu0 %1754, %v218_v2  }
  0x4b   : > { %343 = vperm.xlu1 %1755, %v220_v1   ;;  %347 = vperm.xlu0 %1754, %v221_v4  }
  0x4f   : > { %351 = vperm.xlu1 %1755, %v222_v7   ;;  %355 = vperm.xlu0 %1754, %v223_v6  }
  0x53   : > { %359 = vperm.xlu1 %1755, %v224_v9   ;;  %363 = vperm.xlu0 %1754, %v225_v8  }
  0x57   : > { %367 = vperm.xlu1 %1755, %v226_v11   ;;  %371 = vperm.xlu0 %1754, %v227_v10  }
  0x5b   : > { %375 = vperm.xlu1 %1755, %v228_v13   ;;  %379 = vperm.xlu0 %1754, %v229_v12  }
  0x5f   : > { %383 = vperm.xlu1 %1755, %v230_v15   ;;  %387 = vperm.xlu0 %1754, %v231_v14  }
  0x63   : > { %391 = vperm.xlu1 %1755, %v232_v17   ;;  %395 = vperm.xlu0 %1754, %v233_v16  }
  0x67   : > { %1756 = vset.pattern.permute.xlu1 %v1807_v19  ;;  %1757 = vset.pattern.permute.xlu0 %v1807_v19 }
  0x68   : > { %435 = vperm.xlu1 %1756, %v218_v2   ;;  %439 = vperm.xlu0 %1757, %v219_v5  }
  0x6c   : > { %443 = vperm.xlu1 %1756, %v220_v1   ;;  %451 = vperm.xlu0 %1757, %v222_v7  }
  0x70   : > { %447 = vperm.xlu1 %1756, %v221_v4   ;;  %459 = vperm.xlu0 %1757, %v224_v9  }
  0x74   : > { %455 = vperm.xlu1 %1756, %v223_v6   ;;  %467 = vperm.xlu0 %1757, %v226_v11  }
  0x78   : > { %463 = vperm.xlu1 %1756, %v225_v8   ;;  %475 = vperm.xlu0 %1757, %v228_v13  }
  0x7c   : > { %471 = vperm.xlu1 %1756, %v227_v10   ;;  %483 = vperm.xlu0 %1757, %v230_v15  }
  0x80   : > { %479 = vperm.xlu1 %1756, %v229_v12   ;;  %491 = vperm.xlu0 %1757, %v232_v17  }
  0x84   : > { %487 = vperm.xlu1 %1756, %v231_v14  }
  0x88   : > { %495 = vperm.xlu1 %1756, %v233_v16  }
  0xa1   : > { %v247_v20 = vpop.permute.xlu1 %246  ;;  %v237_v21 = vpop.permute.xlu0 %236 }
  0xa2   : > { %v320_v60 = vmul.f32 %v317_v52, %v247_v20  ;;  %v604_v61 = vmul.f32 %v601_v53, %v247_v20  ;;  %v318_v62 = vmul.f32 %v317_v52, %v237_v21  ;;  %v602_v63 = vmul.f32 %v601_v53, %v237_v21 }
  0xa5   : > { %v252_v22 = vpop.permute.xlu1 %251  ;;  %v242_v23 = vpop.permute.xlu0 %241 }
  0xa6   : > { %v321_v0 = vmul.f32 %v317_v52, %v252_v22  ;;  %v605_v1 = vmul.f32 %v601_v53, %v252_v22  ;;  %v319_v2 = vmul.f32 %v317_v52, %v242_v23  ;;  %v603_v3 = vmul.f32 %v601_v53, %v242_v23 }
  0xa9   : > { %v262_v24 = vpop.permute.xlu1 %261  ;;  %v257_v25 = vpop.permute.xlu0 %256 }
  0xaa   : > { %v1923_v4 = vmul.f32 %v317_v52, %v262_v24  ;;  %v1925_v5 = vmul.f32 %v601_v53, %v262_v24  ;;  %v322_v6 = vmul.f32 %v317_v52, %v257_v25  ;;  %v606_v7 = vmul.f32 %v601_v53, %v257_v25 }
  0xad   : > { %v272_v26 = vpop.permute.xlu1 %271  ;;  %v267_v27 = vpop.permute.xlu0 %266 }
  0xae   : > { %v1927_v8 = vmul.f32 %v317_v52, %v272_v26  ;;  %v1929_v9 = vmul.f32 %v601_v53, %v272_v26  ;;  %v324_v10 = vmul.f32 %v317_v52, %v267_v27  ;;  %v608_v11 = vmul.f32 %v601_v53, %v267_v27 }
  0xb1   : > { %v282_v28 = vpop.permute.xlu1 %281  ;;  %v277_v29 = vpop.permute.xlu0 %276 }
  0xb2   : > { %v1931_v14 = vmul.f32 %v317_v52, %v282_v28  ;;  %v1933_v15 = vmul.f32 %v601_v53, %v282_v28  ;;  %v326_v16 = vmul.f32 %v317_v52, %v277_v29  ;;  %v610_v17 = vmul.f32 %v601_v53, %v277_v29 }
  0xb5   : > { %v292_v30 = vpop.permute.xlu1 %291  ;;  %v287_v31 = vpop.permute.xlu0 %286 }
  0xb6   : > { %v1935_v18 = vmul.f32 %v317_v52, %v292_v30  ;;  %v1937_v19 = vmul.f32 %v601_v53, %v292_v30  ;;  %v328_v20 = vmul.f32 %v317_v52, %v287_v31  ;;  %v612_v21 = vmul.f32 %v601_v53, %v287_v31 }
  0xb9   : > { %v302_v32 = vpop.permute.xlu1 %301  ;;  %v1902_v33 = vpop.permute.xlu0 %296 }
  0xba   : > { %v1939_v22 = vmul.f32 %v317_v52, %v302_v32  ;;  %v1941_v23 = vmul.f32 %v601_v53, %v302_v32  ;;  %v330_v31 = vmul.f32 %v317_v52, %v1902_v33  ;;  %v614_v39 = vmul.f32 %v601_v53, %v1902_v33 }
  0xbd   : > { %v1904_v34 = vpop.permute.xlu1 %311  ;;  %v1906_v35 = vpop.permute.xlu0 %306 }
  0xbe   : > { %v1957_v43 = vmul.f32 %v601_v53, %v1904_v34 }
  0xc0   : > { %2665 = vst [vmem:[#allocation5_spill] sm:$0xff] %v1957_v43 }
  0xc2   : > { %v340_v37 = vpop.permute.xlu1 %339  ;;  %v336_v38 = vpop.permute.xlu0 %335 }
  0xc3   : > { %v403_v24 = vmul.f32 %v1911_v54, %v340_v37  ;;  %v623_v25 = vmul.f32 %v1913_v55, %v340_v37  ;;  %v402_v26 = vmul.f32 %v1911_v54, %v336_v38  ;;  %v622_v27 = vmul.f32 %v1913_v55, %v336_v38 }
  0xc4   : > { %v1954_v37 = vmul.f32 %v317_v52, %v1904_v34  ;;  %v1960_v38 = vmul.f32 %v317_v52, %v1906_v35 }
  0xc5   : > { %v419_v44 = vadd.f32 %v403_v24, %v319_v2  ;;  %v639_v45 = vadd.f32 %v623_v25, %v603_v3  ;;  %v418_v47 = vadd.f32 %v402_v26, %v318_v62 }
  0xc6   : > { %v344_v41 = vpop.permute.xlu1 %343  ;;  %v348_v42 = vpop.permute.xlu0 %347  ;;  %2664 = vst [vmem:[#allocation4_spill] sm:$0xff] %v1954_v37 }
  0xc7   : > { %v404_v28 = vmul.f32 %v1911_v54, %v344_v41  ;;  %v624_v29 = vmul.f32 %v1913_v55, %v344_v41  ;;  %v405_v32 = vmul.f32 %v1911_v54, %v348_v42  ;;  %v625_v40 = vmul.f32 %v1913_v55, %v348_v42 }
  0xc8   : > { %v1963_v41 = vmul.f32 %v601_v53, %v1906_v35  ;;  %v638_v42 = vadd.f32 %v622_v27, %v602_v63 }
  0xc9   : > { %v1967_v50 = vadd.f32 %v404_v28, %v320_v60  ;;  %v1969_v51 = vadd.f32 %v624_v29, %v604_v61  ;;  %v1971_v37 = vadd.f32 %v405_v32, %v321_v0  ;;  %v1973_v52 = vadd.f32 %v625_v40, %v605_v1 }
  0xca   : > { %v352_v48 = vpop.permute.xlu1 %351  ;;  %v1909_v49 = vpop.permute.xlu0 %355 }
  0xcb   : > { %v406_v33 = vmul.f32 %v1911_v54, %v352_v48  ;;  %v626_v46 = vmul.f32 %v1913_v55, %v352_v48  ;;  %v407_v35 = vmul.f32 %v1911_v54, %v1909_v49  ;;  %v627_v53 = vmul.f32 %v1913_v55, %v1909_v49 }
  0xcd   : > { %v1987_v63 = vadd.f32 %v406_v33, %v322_v6  ;;  %v1989_v0 = vadd.f32 %v626_v46, %v606_v7  ;;  %v2001_v6 = vadd.f32 %v627_v53, %v1925_v5  ;;  %v550_v53 = vld [vmem:[#allocation2 + $0xb0] sm:$0xff] }
  0xce   : > { %v1915_v56 = vpop.permute.xlu1 %359  ;;  %v1917_v57 = vpop.permute.xlu0 %363 }
  0xcf   : > { %v408_v48 = vmul.f32 %v1911_v54, %v1915_v56  ;;  %v628_v60 = vmul.f32 %v1913_v55, %v1915_v56  ;;  %v409_v61 = vmul.f32 %v1911_v54, %v1917_v57  ;;  %v629_v62 = vmul.f32 %v1913_v55, %v1917_v57 }
  0xd0   : > { %v1998_v57 = vadd.f32 %v407_v35, %v1923_v4 }
  0xd1   : > { %v2005_v27 = vadd.f32 %v408_v48, %v324_v10  ;;  %v2007_v28 = vadd.f32 %v628_v60, %v608_v11  ;;  %v2013_v29 = vadd.f32 %v629_v62, %v1929_v9 }
  0xd2   : > { %v368_v12 = vpop.permute.xlu1 %367  ;;  %v372_v13 = vpop.permute.xlu0 %371 }
  0xd3   : > { %v410_v1 = vmul.f32 %v1911_v54, %v368_v12  ;;  %v630_v49 = vmul.f32 %v1913_v55, %v368_v12  ;;  %v411_v2 = vmul.f32 %v1911_v54, %v372_v13  ;;  %v631_v3 = vmul.f32 %v1913_v55, %v372_v13 }
  0xd4   : > { %v2010_v13 = vadd.f32 %v409_v61, %v1927_v8 }
  0xd5   : > { %v2017_v4 = vadd.f32 %v630_v49, %v610_v17  ;;  %v2025_v10 = vadd.f32 %v631_v3, %v1933_v15  ;;  %v708_v3 = vld [vmem:[#allocation2 + $0x58] sm:$0xff] }
  0xd6   : > { %v376_v30 = vpop.permute.xlu1 %375  ;;  %v380_v36 = vpop.permute.xlu0 %379 }
  0xd7   : > { %v412_v56 = vmul.f32 %v1911_v54, %v376_v30  ;;  %v632_v24 = vmul.f32 %v1913_v55, %v376_v30  ;;  %v413_v7 = vmul.f32 %v1911_v54, %v380_v36  ;;  %v633_v12 = vmul.f32 %v1913_v55, %v380_v36 }
  0xd8   : > { %v2015_v30 = vadd.f32 %v410_v1, %v326_v16  ;;  %v2022_v36 = vadd.f32 %v411_v2, %v1931_v14  ;;  %v707_v2 = vld [vmem:[#allocation2 + $0x38] sm:$0xff] }
  0xd9   : > { %v2027_v11 = vadd.f32 %v412_v56, %v328_v20  ;;  %v2029_v8 = vadd.f32 %v632_v24, %v612_v21  ;;  %v2032_v9 = vadd.f32 %v413_v7, %v1935_v18  ;;  %v2035_v16 = vadd.f32 %v633_v12, %v1937_v19 }
  0xda   : > { %v384_v34 = vpop.permute.xlu1 %383  ;;  %v388_v43 = vpop.permute.xlu0 %387 }
  0xdb   : > { %v414_v5 = vmul.f32 %v1911_v54, %v384_v34  ;;  %v634_v32 = vmul.f32 %v1913_v55, %v384_v34  ;;  %v2048_v19 = vmul.f32 %v1911_v54, %v388_v43  ;;  %v2051_v35 = vmul.f32 %v1913_v55, %v388_v43  ;;  %v551_v43 = vld [vmem:[#allocation2] sm:$0xff] }
  0xdd   : > { %v2043_v34 = vadd.f32 %v414_v5, %v330_v31  ;;  %v2045_v18 = vadd.f32 %v634_v32, %v614_v39  ;;  %v552_v5 = vld [vmem:[#allocation2 + $0xd8] sm:$0xff] }
  0xde   : > { %v392_v25 = vpop.permute.xlu1 %391  ;;  %v396_v26 = vpop.permute.xlu0 %395 }
  0xdf   : > { %v416_v17 = vmul.f32 %v1911_v54, %v392_v25  ;;  %v636_v40 = vmul.f32 %v1913_v55, %v392_v25  ;;  %v2060_v31 = vmul.f32 %v1911_v54, %v396_v26  ;;  %v2063_v39 = vmul.f32 %v1913_v55, %v396_v26 }
  0xe1   : > { %v2054_v1 = vadd.f32 %v416_v17, %v1960_v38  ;;  %v2057_v49 = vadd.f32 %v636_v40, %v1963_v41 }
  0xe3   : > { %v436_v33 = vpop.permute.xlu1 %435  ;;  %v440_v14 = vpop.permute.xlu0 %439 }
  0xe4   : > { %v502_v46 = vmul.f32 %v1919_v58, %v436_v33  ;;  %v658_v15 = vmul.f32 %v1921_v59, %v436_v33  ;;  %v503_v20 = vmul.f32 %v1919_v58, %v440_v14  ;;  %v659_v21 = vmul.f32 %v1921_v59, %v440_v14 }
  0xe6   : > { %v518_v48 = vadd.f32 %v502_v46, %v418_v47  ;;  %v674_v60 = vadd.f32 %v658_v15, %v638_v42  ;;  %v519_v61 = vadd.f32 %v503_v20, %v419_v44  ;;  %v675_v62 = vadd.f32 %v659_v21, %v639_v45  ;;  %v709_v15 = vld [vmem:[#allocation2 + $0x40] sm:$0xff]  ;;  %v554_v20 = vld [vmem:[#allocation2 + $0x50] sm:$0xff] }
  0xe7   : > { %v444_v56 = vpop.permute.xlu1 %443  ;;  %v452_v47 = vpop.permute.xlu0 %451  ;;  %v711_v21 = vld [vmem:[#allocation2 + $0xe0] sm:$0xff] }
  0xe8   : > { %v534_v42 = vmax.f32 %v518_v48, 0.0  ;;  %v690_v44 = vmax.f32 %v674_v60, 0.0  ;;  %v535_v45 = vmax.f32 %v519_v61, 0.0  ;;  %v691_v24 = vmax.f32 %v675_v62, 0.0  ;;  %v553_v62 = vld [vmem:[#allocation2 + $0x18] sm:$0xff] }
  0xe9   : > { %v504_v38 = vmul.f32 %v1919_v58, %v444_v56  ;;  %v660_v41 = vmul.f32 %v1921_v59, %v444_v56  ;;  %v506_v25 = vmul.f32 %v1919_v58, %v452_v47  ;;  %v662_v54 = vmul.f32 %v1921_v59, %v452_v47 }
  0xea   : > { %v566_v7 = vadd.f32 %v550_v53, %v534_v42  ;;  %v723_v55 = vadd.f32 %v707_v2, %v690_v44  ;;  %v567_v26 = vadd.f32 %v551_v43, %v535_v45  ;;  %v724_v12 = vadd.f32 %v708_v3, %v691_v24  ;;  %v710_v24 = vld [vmem:[#allocation2 + $0xc8] sm:$0xff] }
  0xeb   : > { %v520_v32 = vadd.f32 %v504_v38, %v1967_v50  ;;  %v676_v17 = vadd.f32 %v660_v41, %v1969_v51  ;;  %v522_v40 = vadd.f32 %v506_v25, %v1987_v63  ;;  %v678_v33 = vadd.f32 %v662_v54, %v1989_v0  ;;  %v448_v14 = vpop.permute.xlu1 %447  ;;  %v460_v46 = vpop.permute.xlu0 %459  ;;  %v556_v38 = vld [vmem:[#allocation2 + $0x30] sm:$0xff] }
  0xec   : > { %582 = vst [vmem:[#allocation2 + $0xb0] sm:$0xff] %v566_v7  ;;  %739 = vst [vmem:[#allocation2 + $0x38] sm:$0xff] %v723_v55  ;;  %v505_v53 = vmul.f32 %v1919_v58, %v448_v14  ;;  %v661_v48 = vmul.f32 %v1921_v59, %v448_v14  ;;  %v508_v50 = vmul.f32 %v1919_v58, %v460_v46  ;;  %v713_v41 = vld [vmem:[#allocation2 + $0x70] sm:$0xff] }
  0xed   : > { %583 = vst [vmem:[#allocation2] sm:$0xff] %v567_v26  ;;  %740 = vst [vmem:[#allocation2 + $0x58] sm:$0xff] %v724_v12  ;;  %v664_v51 = vmul.f32 %v1921_v59, %v460_v46  ;;  %v536_v63 = vmax.f32 %v520_v32, 0.0  ;;  %v692_v60 = vmax.f32 %v676_v17, 0.0  ;;  %v538_v0 = vmax.f32 %v522_v40, 0.0 }
  0xee   : > { %v694_v61 = vmax.f32 %v678_v33, 0.0  ;;  %v521_v2 = vadd.f32 %v505_v53, %v1971_v37  ;;  %v677_v43 = vadd.f32 %v661_v48, %v1973_v52  ;;  %v524_v3 = vadd.f32 %v508_v50, %v2005_v27  ;;  %v555_v33 = vld [vmem:[#allocation2 + $0x68] sm:$0xff]  ;;  %v712_v48 = vld [vmem:[#allocation2 + $0x90] sm:$0xff]  ;;  %v558_v50 = vld [vmem:[#allocation2 + $0x80] sm:$0xff] }
  0xef   : > { %v680_v56 = vadd.f32 %v664_v51, %v2007_v28  ;;  %v568_v47 = vadd.f32 %v552_v5, %v536_v63  ;;  %v725_v42 = vadd.f32 %v709_v15, %v692_v60  ;;  %v570_v44 = vadd.f32 %v554_v20, %v538_v0  ;;  %v456_v25 = vpop.permute.xlu1 %455  ;;  %v468_v54 = vpop.permute.xlu0 %467  ;;  %v715_v51 = vld [vmem:[#allocation2 + $0xa8] sm:$0xff] }
  0xf0   : > { %v727_v45 = vadd.f32 %v711_v21, %v694_v61  ;;  %v537_v7 = vmax.f32 %v521_v2, 0.0  ;;  %v693_v55 = vmax.f32 %v677_v43, 0.0  ;;  %v540_v26 = vmax.f32 %v524_v3, 0.0 }
  0xf1   : > { %v696_v12 = vmax.f32 %v680_v56, 0.0  ;;  %584 = vst [vmem:[#allocation2 + $0xd8] sm:$0xff] %v568_v47  ;;  %741 = vst [vmem:[#allocation2 + $0x40] sm:$0xff] %v725_v42  ;;  %v507_v37 = vmul.f32 %v1919_v58, %v456_v25  ;;  %v663_v52 = vmul.f32 %v1921_v59, %v456_v25  ;;  %v510_v27 = vmul.f32 %v1919_v58, %v468_v54 }
  0xf2   : > { %586 = vst [vmem:[#allocation2 + $0x50] sm:$0xff] %v570_v44  ;;  %743 = vst [vmem:[#allocation2 + $0xe0] sm:$0xff] %v727_v45  ;;  %v666_v28 = vmul.f32 %v1921_v59, %v468_v54  ;;  %v569_v5 = vadd.f32 %v553_v62, %v537_v7  ;;  %v726_v32 = vadd.f32 %v710_v24, %v693_v55  ;;  %v557_v62 = vld [vmem:[#allocation2 + $0x48] sm:$0xff]  ;;  %v714_v24 = vld [vmem:[#allocation2 + $0xc0] sm:$0xff] }
  0xf3   : > { %v572_v17 = vadd.f32 %v556_v38, %v540_v26  ;;  %v729_v40 = vadd.f32 %v713_v41, %v696_v12  ;;  %v523_v14 = vadd.f32 %v507_v37, %v1998_v57  ;;  %v679_v46 = vadd.f32 %v663_v52, %v2001_v6  ;;  %v464_v21 = vpop.permute.xlu1 %463  ;;  %v476_v53 = vpop.permute.xlu0 %475  ;;  %v560_v38 = vld [vmem:[#allocation2 + $0xe8] sm:$0xff]  ;;  %v717_v41 = vld [vmem:[#allocation2 + $0x10] sm:$0xff] }
  0xf4   : > { %v526_v15 = vadd.f32 %v510_v27, %v2015_v30  ;;  %v682_v20 = vadd.f32 %v666_v28, %v2017_v4  ;;  %585 = vst [vmem:[#allocation2 + $0x18] sm:$0xff] %v569_v5  ;;  %742 = vst [vmem:[#allocation2 + $0xc8] sm:$0xff] %v726_v32  ;;  %v509_v63 = vmul.f32 %v1919_v58, %v464_v21  ;;  %v559_v5 = vld [vmem:[#allocation2 + $0x88] sm:$0xff] }
  0xf5   : > { %588 = vst [vmem:[#allocation2 + $0x30] sm:$0xff] %v572_v17  ;;  %745 = vst [vmem:[#allocation2 + $0x70] sm:$0xff] %v729_v40  ;;  %v665_v60 = vmul.f32 %v1921_v59, %v464_v21  ;;  %v512_v57 = vmul.f32 %v1919_v58, %v476_v53  ;;  %v668_v6 = vmul.f32 %v1921_v59, %v476_v53  ;;  %v539_v30 = vmax.f32 %v523_v14, 0.0  ;;  %v719_v21 = vld [vmem:[#allocation2 + $0xa0] sm:$0xff] }
  0xf6   : > { %v695_v0 = vmax.f32 %v679_v46, 0.0  ;;  %v542_v4 = vmax.f32 %v526_v15, 0.0  ;;  %v698_v61 = vmax.f32 %v682_v20, 0.0  ;;  %v525_v2 = vadd.f32 %v509_v63, %v2010_v13  ;;  %v716_v15 = vld [vmem:[#allocation2 + $0xd0] sm:$0xff]  ;;  %v562_v20 = vld [vmem:[#allocation2 + $0x60] sm:$0xff]  ;;  %v561_v63 = vld [vmem:[#allocation2 + $0xb8] sm:$0xff] }
  0xf7   : > { %v681_v43 = vadd.f32 %v665_v60, %v2013_v29  ;;  %v528_v3 = vadd.f32 %v512_v57, %v2027_v11  ;;  %v684_v56 = vadd.f32 %v668_v6, %v2029_v8  ;;  %v571_v47 = vadd.f32 %v555_v33, %v539_v30  ;;  %v472_v25 = vpop.permute.xlu1 %471  ;;  %v484_v54 = vpop.permute.xlu0 %483 }
  0xf8   : > { %v728_v42 = vadd.f32 %v712_v48, %v695_v0  ;;  %v574_v44 = vadd.f32 %v558_v50, %v542_v4  ;;  %v731_v45 = vadd.f32 %v715_v51, %v698_v61  ;;  %v541_v7 = vmax.f32 %v525_v2, 0.0  ;;  %v718_v2 = vld [vmem:[#allocation2 + $0x28] sm:$0xff] }
  0xf9   : > { %v697_v55 = vmax.f32 %v681_v43, 0.0  ;;  %v544_v26 = vmax.f32 %v528_v3, 0.0  ;;  %v700_v12 = vmax.f32 %v684_v56, 0.0  ;;  %587 = vst [vmem:[#allocation2 + $0x68] sm:$0xff] %v571_v47  ;;  %v511_v13 = vmul.f32 %v1919_v58, %v472_v25  ;;  %v564_v43 = vld [vmem:[#allocation2 + $0x8] sm:$0xff]  ;;  %v721_v3 = vld [vmem:[#allocation2 + $0x20] sm:$0xff] }
  0xfa   : > { %744 = vst [vmem:[#allocation2 + $0x90] sm:$0xff] %v728_v42  ;;  %590 = vst [vmem:[#allocation2 + $0x80] sm:$0xff] %v574_v44  ;;  %v667_v29 = vmul.f32 %v1921_v59, %v472_v25  ;;  %v514_v11 = vmul.f32 %v1919_v58, %v484_v54  ;;  %v670_v8 = vmul.f32 %v1921_v59, %v484_v54 }
  0xfb   : > { %747 = vst [vmem:[#allocation2 + $0xa8] sm:$0xff] %v731_v45  ;;  %v573_v37 = vadd.f32 %v557_v62, %v541_v7  ;;  %v730_v52 = vadd.f32 %v714_v24, %v697_v55  ;;  %v576_v27 = vadd.f32 %v560_v38, %v544_v26  ;;  %v733_v28 = vadd.f32 %v717_v41, %v700_v12  ;;  %v480_v14 = vpop.permute.xlu1 %479  ;;  %v492_v46 = vpop.permute.xlu0 %491  ;;  %v2666_v26 = vld [vmem:[#allocation4_spill] sm:$0xff]  ;;  %v720_v12 = vld [vmem:[#allocation2 + $0xf8] sm:$0xff] }
  0xfc   : > { %v527_v32 = vadd.f32 %v511_v13, %v2022_v36  ;;  %v683_v17 = vadd.f32 %v667_v29, %v2025_v10  ;;  %v530_v40 = vadd.f32 %v514_v11, %v2043_v34  ;;  %v686_v33 = vadd.f32 %v670_v8, %v2045_v18 }
  0xfd   : > { %589 = vst [vmem:[#allocation2 + $0x48] sm:$0xff] %v573_v37  ;;  %746 = vst [vmem:[#allocation2 + $0xc0] sm:$0xff] %v730_v52  ;;  %v513_v53 = vmul.f32 %v1919_v58, %v480_v14  ;;  %v669_v48 = vmul.f32 %v1921_v59, %v480_v14  ;;  %v516_v36 = vmul.f32 %v1919_v58, %v492_v46 }
  0xfe   : > { %592 = vst [vmem:[#allocation2 + $0xe8] sm:$0xff] %v576_v27  ;;  %749 = vst [vmem:[#allocation2 + $0x10] sm:$0xff] %v733_v28  ;;  %v672_v10 = vmul.f32 %v1921_v59, %v492_v46  ;;  %v543_v34 = vmax.f32 %v527_v32, 0.0  ;;  %v699_v50 = vmax.f32 %v683_v17, 0.0  ;;  %v546_v18 = vmax.f32 %v530_v40, 0.0 }
  0xff   : > { %v702_v51 = vmax.f32 %v686_v33, 0.0  ;;  %v529_v60 = vadd.f32 %v513_v53, %v2032_v9  ;;  %v685_v57 = vadd.f32 %v669_v48, %v2035_v16  ;;  %v532_v6 = vadd.f32 %v516_v36, %v2054_v1  ;;  %v488_v56 = vpop.permute.xlu1 %487 }
 0x100   : > { %v688_v30 = vadd.f32 %v672_v10, %v2057_v49  ;;  %v575_v0 = vadd.f32 %v559_v5, %v543_v34  ;;  %v732_v4 = vadd.f32 %v716_v15, %v699_v50  ;;  %v578_v61 = vadd.f32 %v562_v20, %v546_v18  ;;  %v722_v5 = vld [vmem:[#allocation2 + $0x98] sm:$0xff] }
 0x101   : > { %v735_v62 = vadd.f32 %v719_v21, %v702_v51  ;;  %v545_v47 = vmax.f32 %v529_v60, 0.0  ;;  %v701_v42 = vmax.f32 %v685_v57, 0.0  ;;  %v548_v44 = vmax.f32 %v532_v6, 0.0 }
 0x102   : > { %v704_v45 = vmax.f32 %v688_v30, 0.0  ;;  %v431_v9 = vadd.f32 %v2048_v19, %v1939_v22  ;;  %v651_v16 = vadd.f32 %v2051_v35, %v1941_v23  ;;  %591 = vst [vmem:[#allocation2 + $0x88] sm:$0xff] %v575_v0  ;;  %748 = vst [vmem:[#allocation2 + $0xd0] sm:$0xff] %v732_v4  ;;  %v515_v1 = vmul.f32 %v1919_v58, %v488_v56  ;;  %v2667_v19 = vld [vmem:[#allocation5_spill] sm:$0xff]  ;;  %v563_v35 = vld [vmem:[#allocation2 + $0xf0] sm:$0xff] }
 0x103   : > { %594 = vst [vmem:[#allocation2 + $0x60] sm:$0xff] %v578_v61  ;;  %751 = vst [vmem:[#allocation2 + $0xa0] sm:$0xff] %v735_v62  ;;  %v671_v49 = vmul.f32 %v1921_v59, %v488_v56  ;;  %v577_v24 = vadd.f32 %v561_v63, %v545_v47  ;;  %v734_v38 = vadd.f32 %v718_v2, %v701_v42  ;;  %v496_v55 = vpop.permute.xlu1 %495 }
 0x104   : > { %v580_v41 = vadd.f32 %v564_v43, %v548_v44  ;;  %v737_v25 = vadd.f32 %v721_v3, %v704_v45  ;;  %v531_v54 = vadd.f32 %v515_v1, %v431_v9  ;;  %v433_v22 = vadd.f32 %v2060_v31, %v2666_v26  ;;  %v565_v31 = vld [vmem:[#allocation2 + $0x78] sm:$0xff] }
 0x105   : > { %v687_v7 = vadd.f32 %v671_v49, %v651_v16  ;;  %v653_v23 = vadd.f32 %v2063_v39, %v2667_v19  ;;  %593 = vst [vmem:[#allocation2 + $0xb8] sm:$0xff] %v577_v24  ;;  %750 = vst [vmem:[#allocation2 + $0x28] sm:$0xff] %v734_v38  ;;  %v517_v13 = vmul.f32 %v1919_v58, %v496_v55 }
 0x106   : > { %596 = vst [vmem:[#allocation2 + $0x8] sm:$0xff] %v580_v41  ;;  %753 = vst [vmem:[#allocation2 + $0x20] sm:$0xff] %v737_v25  ;;  %v673_v29 = vmul.f32 %v1921_v59, %v496_v55  ;;  %v547_v11 = vmax.f32 %v531_v54, 0.0 }
 0x107   : > { %v703_v8 = vmax.f32 %v687_v7, 0.0  ;;  %v533_v37 = vadd.f32 %v517_v13, %v433_v22 }
 0x108   : > { %v689_v52 = vadd.f32 %v673_v29, %v653_v23  ;;  %v579_v27 = vadd.f32 %v563_v35, %v547_v11 }
 0x109   : > { %v736_v28 = vadd.f32 %v720_v12, %v703_v8  ;;  %v549_v32 = vmax.f32 %v533_v37, 0.0 }
 0x10a   : > { %v705_v39 = vmax.f32 %v689_v52, 0.0  ;;  %595 = vst [vmem:[#allocation2 + $0xf0] sm:$0xff] %v579_v27  ;;  %758 = sbr.rel (%p1614_p5) target bundleno = 1024 (0x400), region = 44 }
 0x10b   : > { %752 = vst [vmem:[#allocation2 + $0xf8] sm:$0xff] %v736_v28  ;;  %v581_v17 = vadd.f32 %v565_v31, %v549_v32 }
 0x10c   : > { %v738_v40 = vadd.f32 %v722_v5, %v705_v39 }
 0x10d   : > { %597 = vst [vmem:[#allocation2 + $0x78] sm:$0xff] %v581_v17 }
 0x10e   : > { %754 = vst [vmem:[#allocation2 + $0x98] sm:$0xff] %v738_v40 }
 0x10f   : > { %v773_v59 = vld [vmem:[#allocation2 + $0x8] sm:$0xff]  ;;  %v854_v14 = vld [vmem:[#allocation2 + $0x20] sm:$0xff]  ;;  %v770_v53 = vld [vmem:[#allocation2 + $0xb8] sm:$0xff]  ;;  %v1808_v1 = vmov 0   ;;  %v1809_v12 = vmov 1   ;;  %vm823_vm0 = vcmask 7168  }
 0x110   : > { %803 = vadd.xlane.f32.xlu1 %v773_v59  ;;  %v771_v20 = vld [vmem:[#allocation2 + $0x60] sm:$0xff]  ;;  %v851_v48 = vld [vmem:[#allocation2 + $0x28] sm:$0xff]  ;;  %v850_v10 = vld [vmem:[#allocation2 + $0x10] sm:$0xff]  ;;  %1758 = vset.pattern.permute.xlu0 %v1808_v1  ;;  %v1810_v27 = vmov 2   ;;  %vm904_vm1 = vcmask 15368   ;;  %vm1194_vm2 = vcmask 15360  }
 0x111   : > { %v772_v46 = vld [vmem:[#allocation2 + $0xf0] sm:$0xff]  ;;  %v852_v21 = vld [vmem:[#allocation2 + $0xa0] sm:$0xff]  ;;  %v769_v36 = vld [vmem:[#allocation2 + $0xe8] sm:$0xff]  ;;  %1759 = vset.pattern.permute.xlu1 %v1808_v1 }
 0x112   : > { %v853_v15 = vld [vmem:[#allocation2 + $0xf8] sm:$0xff]  ;;  %v768_v34 = vld [vmem:[#allocation2 + $0x88] sm:$0xff]  ;;  %v849_v50 = vld [vmem:[#allocation2 + $0xd0] sm:$0xff] }
 0x113   : > { %v767_v18 = vld [vmem:[#allocation2 + $0x80] sm:$0xff]  ;;  %v848_v51 = vld [vmem:[#allocation2 + $0xa8] sm:$0xff]  ;;  %v765_v57 = vld [vmem:[#allocation2 + $0x30] sm:$0xff] }
 0x114   : > { %v774_v58 = vld [vmem:[#allocation2 + $0x78] sm:$0xff]  ;;  %884 = vadd.xlane.f32.xlu1 %v854_v14  ;;  %v766_v63 = vld [vmem:[#allocation2 + $0x48] sm:$0xff]  ;;  %v847_v60 = vld [vmem:[#allocation2 + $0xc0] sm:$0xff] }
 0x115   : > { %805 = vadd.xlane.f32.xlu0 %v774_v58  ;;  %v855_v33 = vld [vmem:[#allocation2 + $0x98] sm:$0xff]  ;;  %v846_v6 = vld [vmem:[#allocation2 + $0x70] sm:$0xff]  ;;  %v764_v30 = vld [vmem:[#allocation2 + $0x68] sm:$0xff] }
 0x116   : > { %v845_v0 = vld [vmem:[#allocation2 + $0x90] sm:$0xff]  ;;  %v844_v61 = vld [vmem:[#allocation2 + $0xe0] sm:$0xff]  ;;  %v762_v62 = vld [vmem:[#allocation2 + $0x18] sm:$0xff] }
 0x117   : > { %v763_v4 = vld [vmem:[#allocation2 + $0x50] sm:$0xff]  ;;  %v843_v2 = vld [vmem:[#allocation2 + $0xc8] sm:$0xff]  ;;  %v761_v43 = vld [vmem:[#allocation2 + $0xd8] sm:$0xff] }
 0x118   : > { %882 = vadd.xlane.f32.xlu1 %v853_v15  ;;  %v842_v3 = vld [vmem:[#allocation2 + $0x40] sm:$0xff]  ;;  %v841_v47 = vld [vmem:[#allocation2 + $0x58] sm:$0xff]  ;;  %v759_v42 = vld [vmem:[#allocation2 + $0xb0] sm:$0xff] }
 0x119   : > { %886 = vadd.xlane.f32.xlu0 %v855_v33  ;;  %v760_v56 = vld [vmem:[#allocation2] sm:$0xff]  ;;  %v840_v44 = vld [vmem:[#allocation2 + $0x38] sm:$0xff]  ;;  %v954_v16 = vld [vmem:[%s2662_s3 + $0x8] sm:$0xff] }
 0x11a   : > { %v921_v45 = vld [vmem:[%s2661_s2] sm:$0xff]  ;;  %v2138_v49 = vld [vmem:[%s2662_s3 + $0x10] sm:$0xff]  ;;  %v2144_v24 = vld [vmem:[%s2662_s3 + $0x18] sm:$0xff] }
 0x11b   : > { %v929_v9 = vld [vmem:[%s2661_s2 + $0x40] sm:$0xff]  ;;  %1681 = vmatprep.mubr.f32.mxu0 %v921_v45  ;;  %v2159_v25 = vld [vmem:[%s2662_s3 + $0x48] sm:$0xff]  ;;  %v2170_v7 = vld [vmem:[%s2662_s3 + $0x58] sm:$0xff] }
 0x11c   : > { %880 = vadd.xlane.f32.xlu1 %v852_v21  ;;  %1693 = vmatprep.mubr.f32.mxu1 %v929_v9  ;;  %v957_v38 = vld [vmem:[%s2662_s3 + $0x20] sm:$0xff]  ;;  %v2164_v54 = vld [vmem:[%s2662_s3 + $0x28] sm:$0xff]  ;;  %v2176_v55 = vld [vmem:[%s2662_s3 + $0x30] sm:$0xff] }
 0x11d   : > { %801 = vadd.xlane.f32.xlu0 %v772_v46  ;;  %v2153_v41 = vld [vmem:[%s2662_s3] sm:$0xff]  ;;  %v2182_v26 = vld [vmem:[%s2662_s3 + $0x68] sm:$0xff]  ;;  %v2188_v22 = vld [vmem:[%s2662_s3 + $0x38] sm:$0xff] }
 0x11e   : > { %v2194_v19 = vld [vmem:[%s2662_s3 + $0x78] sm:$0xff]  ;;  %v2200_v23 = vld [vmem:[%s2662_s3 + $0x40] sm:$0xff]  ;;  %v2207_v35 = vld [vmem:[%s2662_s3 + $0x50] sm:$0xff] }
 0x11f   : > { %v2214_v13 = vld [vmem:[%s2662_s3 + $0x60] sm:$0xff]  ;;  %v2221_v29 = vld [vmem:[%s2662_s3 + $0x70] sm:$0xff] }
 0x120   : > { %878 = vadd.xlane.f32.xlu1 %v851_v48 }
 0x121   : > { %799 = vadd.xlane.f32.xlu0 %v771_v20 }
 0x124   : > { %876 = vadd.xlane.f32.xlu1 %v850_v10 }
 0x125   : > { %797 = vadd.xlane.f32.xlu0 %v770_v53 }
 0x128   : > { %874 = vadd.xlane.f32.xlu1 %v849_v50 }
 0x129   : > { %795 = vadd.xlane.f32.xlu0 %v769_v36 }
 0x12c   : > { %872 = vadd.xlane.f32.xlu1 %v848_v51 }
 0x12d   : > { %793 = vadd.xlane.f32.xlu0 %v768_v34 }
 0x130   : > { %870 = vadd.xlane.f32.xlu1 %v847_v60 }
 0x131   : > { %791 = vadd.xlane.f32.xlu0 %v767_v18 }
 0x134   : > { %868 = vadd.xlane.f32.xlu1 %v846_v6 }
 0x135   : > { %789 = vadd.xlane.f32.xlu0 %v766_v63 }
 0x138   : > { %866 = vadd.xlane.f32.xlu1 %v845_v0 }
 0x139   : > { %787 = vadd.xlane.f32.xlu0 %v765_v57 }
 0x13c   : > { %864 = vadd.xlane.f32.xlu1 %v844_v61 }
 0x13d   : > { %785 = vadd.xlane.f32.xlu0 %v764_v30 }
 0x140   : > { %862 = vadd.xlane.f32.xlu1 %v843_v2 }
 0x141   : > { %783 = vadd.xlane.f32.xlu0 %v763_v4 }
 0x144   : > { %860 = vadd.xlane.f32.xlu1 %v842_v3 }
 0x145   : > { %781 = vadd.xlane.f32.xlu0 %v762_v62 }
 0x148   : > { %858 = vadd.xlane.f32.xlu1 %v841_v47 }
 0x149   : > { %779 = vadd.xlane.f32.xlu0 %v761_v43 }
 0x14c   : > { %856 = vadd.xlane.f32.xlu1 %v840_v44 }
 0x14d   : > { %777 = vadd.xlane.f32.xlu0 %v760_v56 }
 0x151   : > { %775 = vadd.xlane.f32.xlu0 %v759_v42 }
 0x15d   : > { %976 = vperm.xlu1 %1759, %v954_v16  }
 0x161   : > { %981 = vperm.xlu1 %1759, %v2138_v49  }
 0x165   : > { %986 = vperm.xlu1 %1759, %v2144_v24  }
 0x167   : > { %971 = vperm.xlu0 %1758, %v2153_v41  }
 0x169   : > { %991 = vperm.xlu1 %1759, %v957_v38  }
 0x16b   : > { %1016 = vperm.xlu0 %1758, %v2159_v25  }
 0x16d   : > { %996 = vperm.xlu1 %1759, %v2164_v54  }
 0x16f   : > { %1026 = vperm.xlu0 %1758, %v2170_v7  }
 0x171   : > { %1001 = vperm.xlu1 %1759, %v2176_v55  }
 0x173   : > { %1036 = vperm.xlu0 %1758, %v2182_v26  }
 0x175   : > { %1006 = vperm.xlu1 %1759, %v2188_v22  }
 0x177   : > { %1046 = vperm.xlu0 %1758, %v2194_v19  }
 0x179   : > { %1011 = vperm.xlu1 %1759, %v2200_v23  }
 0x17b   : > { %1760 = vset.pattern.permute.xlu0 %v1809_v12 }
 0x17c   : > { %1405 = vperm.xlu0 %1760, %v2153_v41  }
 0x17d   : > { %1021 = vperm.xlu1 %1759, %v2207_v35  }
 0x180   : > { %1441 = vperm.xlu0 %1760, %v2159_v25  }
 0x181   : > { %1031 = vperm.xlu1 %1759, %v2214_v13  }
 0x184   : > { %1449 = vperm.xlu0 %1760, %v2170_v7  }
 0x185   : > { %1041 = vperm.xlu1 %1759, %v2221_v29  }
 0x188   : > { %1457 = vperm.xlu0 %1760, %v2182_v26  }
 0x189   : > { %1761 = vset.pattern.permute.xlu1 %v1809_v12 }
 0x18a   : > { %1409 = vperm.xlu1 %1761, %v954_v16  }
 0x18c   : > { %1465 = vperm.xlu0 %1760, %v2194_v19  }
 0x18e   : > { %1413 = vperm.xlu1 %1761, %v2138_v49  }
 0x190   : > { %1763 = vset.pattern.permute.xlu0 %v1810_v27 }
 0x191   : > { %1489 = vperm.xlu0 %1763, %v954_v16  }
 0x192   : > { %1417 = vperm.xlu1 %1761, %v2144_v24  }
 0x195   : > { %1501 = vperm.xlu0 %1763, %v957_v38  }
 0x196   : > { %1421 = vperm.xlu1 %1761, %v957_v38  }
 0x199   : > { %v804_v8 = vpop.xlane.xlu1 %803  ;;  %1509 = vperm.xlu0 %1763, %v2176_v55  }
 0x19a   : > { %v821_v52 = vmul.f32 0.00390625, %v804_v8  ;;  %1425 = vperm.xlu1 %1761, %v2164_v54  }
 0x19c   : > { %838 = vst.msk [vmem:[#allocation3 + $0x70] sm:$0xff] %vm823_vm0, %v821_v52 }
 0x19d   : > { %v885_v31 = vpop.xlane.xlu1 %884  ;;  %1517 = vperm.xlu0 %1763, %v2200_v23  }
 0x19e   : > { %v806_v11 = vpop.xlane.xlu0 %805  ;;  %v902_v32 = vmul.f32 0.00390625, %v885_v31  ;;  %1429 = vperm.xlu1 %1761, %v2176_v55  }
 0x19f   : > { %v822_v37 = vmul.f32 0.00390625, %v806_v11 }
 0x1a0   : > { %919 = vst.msk [vmem:[#allocation3 + $0x70] sm:$0xff] %vm904_vm1, %v902_v32 }
 0x1a1   : > { %839 = vst.msk [vmem:[#allocation3 + $0x78] sm:$0xff] %vm823_vm0, %v822_v37  ;;  %v883_v17 = vpop.xlane.xlu1 %882  ;;  %1525 = vperm.xlu0 %1763, %v2207_v35  }
 0x1a2   : > { %v887_v28 = vpop.xlane.xlu0 %886  ;;  %v901_v58 = vmul.f32 0.00390625, %v883_v17  ;;  %1433 = vperm.xlu1 %1761, %v2188_v22  }
 0x1a3   : > { %v903_v5 = vmul.f32 0.00390625, %v887_v28 }
 0x1a5   : > { %920 = vst.msk [vmem:[#allocation3 + $0x78] sm:$0xff] %vm904_vm1, %v903_v5  ;;  %v881_v33 = vpop.xlane.xlu1 %880 }
 0x1a6   : > { %v802_v39 = vpop.xlane.xlu0 %801  ;;  %v900_v46 = vmul.f32 0.00390625, %v881_v33  ;;  %1437 = vperm.xlu1 %1761, %v2200_v23  }
 0x1a7   : > { %v820_v40 = vmul.f32 0.00390625, %v802_v39  ;;  %v951_v20 = vld [vmem:[#allocation3 + $0x70] sm:$0xff] }
 0x1a9   : > { %837 = vst.msk [vmem:[#allocation3 + $0x68] sm:$0xff] %vm823_vm0, %v820_v40  ;;  %v879_v53 = vpop.xlane.xlu1 %878 }
 0x1aa   : > { %918 = vst.msk [vmem:[#allocation3 + $0x68] sm:$0xff] %vm904_vm1, %v901_v58  ;;  %v800_v59 = vpop.xlane.xlu0 %799  ;;  %v899_v36 = vmul.f32 0.00390625, %v879_v53  ;;  %1445 = vperm.xlu1 %1761, %v2207_v35  }
 0x1ab   : > { %v819_v14 = vmul.f32 0.00390625, %v800_v59 }
 0x1ac   : > { %v952_v15 = vld [vmem:[#allocation3 + $0x78] sm:$0xff] }
 0x1ad   : > { %836 = vst.msk [vmem:[#allocation3 + $0x60] sm:$0xff] %vm823_vm0, %v819_v14  ;;  %1649 = vmatprep.subr.mxu0 %v952_v15  ;;  %1705 = vmatprep.subr.mxu1 %v952_v15  ;;  %v877_v50 = vpop.xlane.xlu1 %876 }
 0x1ae   : > { %917 = vst.msk [vmem:[#allocation3 + $0x60] sm:$0xff] %vm904_vm1, %v900_v46  ;;  %1650 = vmatpush3.msra.mxu0 %v952_v15  ;;  %1721 = vmatpush3.msra.mxu1 %v952_v15  ;;  %v798_v21 = vpop.xlane.xlu0 %797  ;;  %v898_v51 = vmul.f32 0.00390625, %v877_v50  ;;  %v931_v50 = vld [vmem:[%s2661_s2 + $0x50] sm:$0xff] }
 0x1af   : > { %v818_v48 = vmul.f32 0.00390625, %v798_v21  ;;  %1651 = vmatprep.subr.mxu0 %v951_v20  ;;  %1706 = vmatprep.subr.mxu1 %v951_v20 }
 0x1b0   : > { %1652 = vmatpush3.msra.mxu0 %v951_v20  ;;  %1722 = vmatpush3.msra.mxu1 %v951_v20 }
 0x1b1   : > { %835 = vst.msk [vmem:[#allocation3 + $0x58] sm:$0xff] %vm823_vm0, %v818_v48  ;;  %v950_v10 = vld [vmem:[#allocation3 + $0x68] sm:$0xff]  ;;  %v875_v57 = vpop.xlane.xlu1 %874  ;;  %1453 = vperm.xlu1 %1761, %v2214_v13  }
 0x1b2   : > { %916 = vst.msk [vmem:[#allocation3 + $0x58] sm:$0xff] %vm904_vm1, %v899_v36  ;;  %1653 = vmatprep.subr.mxu0 %v950_v10  ;;  %1707 = vmatprep.subr.mxu1 %v950_v10  ;;  %v796_v34 = vpop.xlane.xlu0 %795  ;;  %v897_v30 = vmul.f32 0.00390625, %v875_v57  ;;  %v934_v57 = vld [vmem:[%s2661_s2 + $0x68] sm:$0xff] }
 0x1b3   : > { %v817_v18 = vmul.f32 0.00390625, %v796_v34  ;;  %1654 = vmatpush3.msra.mxu0 %v950_v10  ;;  %1723 = vmatpush3.msra.mxu1 %v950_v10  ;;  %v930_v34 = vld [vmem:[%s2661_s2 + $0x48] sm:$0xff] }
 0x1b5   : > { %834 = vst.msk [vmem:[#allocation3 + $0x50] sm:$0xff] %vm823_vm0, %v817_v18  ;;  %v949_v63 = vld [vmem:[#allocation3 + $0x60] sm:$0xff]  ;;  %v873_v61 = vpop.xlane.xlu1 %872  ;;  %1461 = vperm.xlu1 %1761, %v2221_v29   ;;  %v932_v18 = vld [vmem:[%s2661_s2 + $0x58] sm:$0xff] }
 0x1b6   : > { %915 = vst.msk [vmem:[#allocation3 + $0x50] sm:$0xff] %vm904_vm1, %v898_v51  ;;  %1655 = vmatprep.subr.mxu0 %v949_v63  ;;  %1708 = vmatprep.subr.mxu1 %v949_v63  ;;  %v794_v60 = vpop.xlane.xlu0 %793  ;;  %v896_v2 = vmul.f32 0.00390625, %v873_v61  ;;  %v925_v51 = vld [vmem:[%s2661_s2 + $0x20] sm:$0xff] }
 0x1b7   : > { %v816_v6 = vmul.f32 0.00390625, %v794_v60  ;;  %1656 = vmatpush3.msra.mxu0 %v949_v63  ;;  %1724 = vmatpush3.msra.mxu1 %v949_v63  ;;  %v933_v63 = vld [vmem:[%s2661_s2 + $0x60] sm:$0xff]  ;;  %v926_v60 = vld [vmem:[%s2661_s2 + $0x28] sm:$0xff] }
 0x1b9   : > { %833 = vst.msk [vmem:[#allocation3 + $0x48] sm:$0xff] %vm823_vm0, %v816_v6  ;;  %v948_v0 = vld [vmem:[#allocation3 + $0x58] sm:$0xff]  ;;  %v871_v56 = vpop.xlane.xlu1 %870  ;;  %1762 = vset.pattern.permute.xlu1 %v1810_v27  ;;  %v927_v6 = vld [vmem:[%s2661_s2 + $0x30] sm:$0xff] }
 0x1ba   : > { %914 = vst.msk [vmem:[#allocation3 + $0x48] sm:$0xff] %vm904_vm1, %v897_v30  ;;  %1657 = vmatprep.subr.mxu0 %v948_v0  ;;  %1709 = vmatprep.subr.mxu1 %v948_v0  ;;  %v792_v4 = vpop.xlane.xlu0 %791  ;;  %v895_v42 = vmul.f32 0.00390625, %v871_v56  ;;  %v935_v30 = vld [vmem:[%s2661_s2 + $0x70] sm:$0xff] }
 0x1bb   : > { %v815_v62 = vmul.f32 0.00390625, %v792_v4  ;;  %1658 = vmatpush3.msra.mxu0 %v948_v0  ;;  %1725 = vmatpush3.msra.mxu1 %v948_v0  ;;  %v928_v0 = vld [vmem:[%s2661_s2 + $0x38] sm:$0xff] }
 0x1bc   : > { %1485 = vperm.xlu1 %1762, %v2153_v41   ;;  %v936_v4 = vld [vmem:[%s2661_s2 + $0x78] sm:$0xff] }
 0x1bd   : > { %832 = vst.msk [vmem:[#allocation3 + $0x40] sm:$0xff] %vm823_vm0, %v815_v62  ;;  %v947_v43 = vld [vmem:[#allocation3 + $0x50] sm:$0xff]  ;;  %v869_v9 = vpop.xlane.xlu1 %868 }
 0x1be   : > { %913 = vst.msk [vmem:[#allocation3 + $0x40] sm:$0xff] %vm904_vm1, %v896_v2  ;;  %1659 = vmatprep.subr.mxu0 %v947_v43  ;;  %1710 = vmatprep.subr.mxu1 %v947_v43  ;;  %v790_v3 = vpop.xlane.xlu0 %789  ;;  %v894_v1 = vmul.f32 0.00390625, %v869_v9 }
 0x1bf   : > { %v814_v47 = vmul.f32 0.00390625, %v790_v3  ;;  %1660 = vmatpush3.msra.mxu0 %v947_v43  ;;  %1726 = vmatpush3.msra.mxu1 %v947_v43 }
 0x1c0   : > { %1493 = vperm.xlu1 %1762, %v2138_v49  }
 0x1c1   : > { %831 = vst.msk [vmem:[#allocation3 + $0x38] sm:$0xff] %vm823_vm0, %v814_v47  ;;  %v946_v44 = vld [vmem:[#allocation3 + $0x48] sm:$0xff]  ;;  %v867_v23 = vpop.xlane.xlu1 %866 }
 0x1c2   : > { %912 = vst.msk [vmem:[#allocation3 + $0x38] sm:$0xff] %vm904_vm1, %v895_v42  ;;  %1661 = vmatprep.subr.mxu0 %v946_v44  ;;  %1711 = vmatprep.subr.mxu1 %v946_v44  ;;  %v788_v45 = vpop.xlane.xlu0 %787  ;;  %v893_v12 = vmul.f32 0.00390625, %v867_v23 }
 0x1c3   : > { %v813_v16 = vmul.f32 0.00390625, %v788_v45  ;;  %1662 = vmatpush3.msra.mxu0 %v946_v44  ;;  %1727 = vmatpush3.msra.mxu1 %v946_v44 }
 0x1c4   : > { %1497 = vperm.xlu1 %1762, %v2144_v24  }
 0x1c5   : > { %830 = vst.msk [vmem:[#allocation3 + $0x30] sm:$0xff] %vm823_vm0, %v813_v16  ;;  %v945_v38 = vld [vmem:[#allocation3 + $0x40] sm:$0xff]  ;;  %v865_v37 = vpop.xlane.xlu1 %864 }
 0x1c6   : > { %911 = vst.msk [vmem:[#allocation3 + $0x30] sm:$0xff] %vm904_vm1, %v894_v1  ;;  %1663 = vmatprep.subr.mxu0 %v945_v38  ;;  %1712 = vmatprep.subr.mxu1 %v945_v38  ;;  %v786_v55 = vpop.xlane.xlu0 %785  ;;  %v892_v28 = vmul.f32 0.00390625, %v865_v37 }
 0x1c7   : > { %v812_v35 = vmul.f32 0.00390625, %v786_v55  ;;  %1664 = vmatpush3.msra.mxu0 %v945_v38  ;;  %1728 = vmatpush3.msra.mxu1 %v945_v38 }
 0x1c8   : > { %1505 = vperm.xlu1 %1762, %v2164_v54  }
 0x1c9   : > { %829 = vst.msk [vmem:[#allocation3 + $0x28] sm:$0xff] %vm823_vm0, %v812_v35  ;;  %v944_v11 = vld [vmem:[#allocation3 + $0x38] sm:$0xff]  ;;  %v863_v5 = vpop.xlane.xlu1 %862 }
 0x1ca   : > { %910 = vst.msk [vmem:[#allocation3 + $0x28] sm:$0xff] %vm904_vm1, %v893_v12  ;;  %1665 = vmatprep.subr.mxu0 %v944_v11  ;;  %1713 = vmatprep.subr.mxu1 %v944_v11  ;;  %v784_v8 = vpop.xlane.xlu0 %783  ;;  %v891_v39 = vmul.f32 0.00390625, %v863_v5 }
 0x1cb   : > { %v811_v52 = vmul.f32 0.00390625, %v784_v8  ;;  %1666 = vmatpush3.msra.mxu0 %v944_v11  ;;  %1729 = vmatpush3.msra.mxu1 %v944_v11 }
 0x1cc   : > { %1513 = vperm.xlu1 %1762, %v2188_v22   ;;  %v922_v22 = vld [vmem:[%s2661_s2 + $0x8] sm:$0xff] }
 0x1cd   : > { %828 = vst.msk [vmem:[#allocation3 + $0x20] sm:$0xff] %vm823_vm0, %v811_v52  ;;  %v943_v31 = vld [vmem:[#allocation3 + $0x30] sm:$0xff]  ;;  %v861_v40 = vpop.xlane.xlu1 %860 }
 0x1ce   : > { %909 = vst.msk [vmem:[#allocation3 + $0x20] sm:$0xff] %vm904_vm1, %v892_v28  ;;  %1667 = vmatprep.subr.mxu0 %v943_v31  ;;  %1714 = vmatprep.subr.mxu1 %v943_v31  ;;  %v782_v27 = vpop.xlane.xlu0 %781  ;;  %v890_v59 = vmul.f32 0.00390625, %v861_v40 }
 0x1cf   : > { %v810_v32 = vmul.f32 0.00390625, %v782_v27  ;;  %1668 = vmatpush3.msra.mxu0 %v943_v31  ;;  %1730 = vmatpush3.msra.mxu1 %v943_v31 }
 0x1d0   : > { %1521 = vperm.xlu1 %1762, %v2159_v25   ;;  %v923_v25 = vld [vmem:[%s2661_s2 + $0x10] sm:$0xff] }
 0x1d1   : > { %827 = vst.msk [vmem:[#allocation3 + $0x18] sm:$0xff] %vm823_vm0, %v810_v32  ;;  %v942_v17 = vld [vmem:[#allocation3 + $0x28] sm:$0xff]  ;;  %v859_v14 = vpop.xlane.xlu1 %858 }
 0x1d2   : > { %908 = vst.msk [vmem:[#allocation3 + $0x18] sm:$0xff] %vm904_vm1, %v891_v39  ;;  %1669 = vmatprep.subr.mxu0 %v942_v17  ;;  %1715 = vmatprep.subr.mxu1 %v942_v17  ;;  %v780_v41 = vpop.xlane.xlu0 %779  ;;  %v889_v15 = vmul.f32 0.00390625, %v859_v14 }
 0x1d3   : > { %v809_v58 = vmul.f32 0.00390625, %v780_v41  ;;  %1670 = vmatpush3.msra.mxu0 %v942_v17  ;;  %1731 = vmatpush3.msra.mxu1 %v942_v17 }
 0x1d4   : > { %1529 = vperm.xlu1 %1762, %v2170_v7   ;;  %v924_v7 = vld [vmem:[%s2661_s2 + $0x18] sm:$0xff] }
 0x1d5   : > { %826 = vst.msk [vmem:[#allocation3 + $0x10] sm:$0xff] %vm823_vm0, %v809_v58  ;;  %v941_v33 = vld [vmem:[#allocation3 + $0x20] sm:$0xff]  ;;  %v857_v21 = vpop.xlane.xlu1 %856 }
 0x1d6   : > { %907 = vst.msk [vmem:[#allocation3 + $0x10] sm:$0xff] %vm904_vm1, %v890_v59  ;;  %1671 = vmatprep.subr.mxu0 %v941_v33  ;;  %1716 = vmatprep.subr.mxu1 %v941_v33  ;;  %v778_v49 = vpop.xlane.xlu0 %777  ;;  %v888_v48 = vmul.f32 0.00390625, %v857_v21 }
 0x1d7   : > { %v808_v46 = vmul.f32 0.00390625, %v778_v49  ;;  %1672 = vmatpush3.msra.mxu0 %v941_v33  ;;  %1732 = vmatpush3.msra.mxu1 %v941_v33 }
 0x1d9   : > { %825 = vst.msk [vmem:[#allocation3 + $0x8] sm:$0xff] %vm823_vm0, %v808_v46  ;;  %v940_v20 = vld [vmem:[#allocation3 + $0x18] sm:$0xff]  ;;  %v977_v61 = vpop.permute.xlu1 %976 }
 0x1da   : > { %906 = vst.msk [vmem:[#allocation3 + $0x8] sm:$0xff] %vm904_vm1, %v889_v15  ;;  %1673 = vmatprep.subr.mxu0 %v940_v20  ;;  %1717 = vmatprep.subr.mxu1 %v940_v20  ;;  %v776_v24 = vpop.xlane.xlu0 %775 }
 0x1db   : > { %v807_v53 = vmul.f32 0.00390625, %v776_v24  ;;  %1674 = vmatpush3.msra.mxu0 %v940_v20  ;;  %1733 = vmatpush3.msra.mxu1 %v940_v20 }
 0x1dd   : > { %824 = vst.msk [vmem:[#allocation3] sm:$0xff] %vm823_vm0, %v807_v53  ;;  %v939_v36 = vld [vmem:[#allocation3 + $0x10] sm:$0xff]  ;;  %v982_v62 = vpop.permute.xlu1 %981 }
 0x1de   : > { %905 = vst.msk [vmem:[#allocation3] sm:$0xff] %vm904_vm1, %v888_v48  ;;  %1675 = vmatprep.subr.mxu0 %v939_v36  ;;  %1718 = vmatprep.subr.mxu1 %v939_v36 }
 0x1df   : > { %1676 = vmatpush3.msra.mxu0 %v939_v36  ;;  %1734 = vmatpush3.msra.mxu1 %v939_v36 }
 0x1e1   : > { %v938_v54 = vld [vmem:[#allocation3 + $0x8] sm:$0xff]  ;;  %v987_v2 = vpop.permute.xlu1 %986 }
 0x1e2   : > { %1677 = vmatprep.subr.mxu0 %v938_v54  ;;  %1719 = vmatprep.subr.mxu1 %v938_v54  ;;  %v972_v47 = vpop.permute.xlu0 %971 }
 0x1e3   : > { %1678 = vmatpush3.msra.mxu0 %v938_v54  ;;  %1735 = vmatpush3.msra.mxu1 %v938_v54 }
 0x1e5   : > { %v937_v10 = vld [vmem:[#allocation3] sm:$0xff]  ;;  %v992_v43 = vpop.permute.xlu1 %991 }
 0x1e6   : > { %1679 = vmatprep.subr.mxu0 %v937_v10  ;;  %1720 = vmatprep.subr.mxu1 %v937_v10  ;;  %v1017_v44 = vpop.permute.xlu0 %1016 }
 0x1e7   : > { %1680 = vmatpush3.msra.mxu0 %v937_v10  ;;  %1736 = vmatpush3.msra.mxu1 %v937_v10 }
 0x1e8   : > { %1682 = vmatmul.mubr.f32.vlgmr.msra.gmra.mxu0 %v922_v22  ;;  %1694 = vmatmul.mubr.f32.vlgmr.msra.gmra.mxu1 %v930_v34 }
 0x1e9   : > { %1684 = vmatprep.mubr.f32.mxu0 %v923_v25  ;;  %1696 = vmatprep.mubr.f32.mxu1 %v931_v50  ;;  %v997_v3 = vpop.permute.xlu1 %996 }
 0x1ea   : > { %v1027_v40 = vpop.permute.xlu0 %1026 }
 0x1ec   : > { %1685 = vmatmul.mubr.f32.gmra.mxu0 %v924_v7  ;;  %1697 = vmatmul.mubr.f32.gmra.mxu1 %v932_v18 }
 0x1ed   : > { %1687 = vmatprep.mubr.f32.mxu0 %v925_v51  ;;  %1699 = vmatprep.mubr.f32.mxu1 %v933_v63  ;;  %v1002_v56 = vpop.permute.xlu1 %1001 }
 0x1ee   : > { %v1037_v54 = vpop.permute.xlu0 %1036 }
 0x1f0   : > { %1688 = vmatmul.mubr.f32.gmra.mxu0 %v926_v60  ;;  %1700 = vmatmul.mubr.f32.gmra.mxu1 %v934_v57 }
 0x1f1   : > { %1690 = vmatprep.mubr.f32.mxu0 %v927_v6  ;;  %1702 = vmatprep.mubr.f32.mxu1 %v935_v30  ;;  %v1007_v42 = vpop.permute.xlu1 %1006 }
 0x1f2   : > { %v1047_v30 = vpop.permute.xlu0 %1046 }
 0x1f4   : > { %1691 = vmatmul.mubr.f32.gmra.mxu0 %v928_v0  ;;  %1703 = vmatmul.mubr.f32.gmra.mxu1 %v936_v4 }
 0x1f5   : > { %v1012_v16 = vpop.permute.xlu1 %1011 }
 0x1f9   : > { %v1022_v41 = vpop.permute.xlu1 %1021 }
 0x1fd   : > { %v1032_v36 = vpop.permute.xlu1 %1031 }
 0x201   : > { %v1042_v6 = vpop.permute.xlu1 %1041 }
 0x2a8   : > { %v1683_v45 = vpop.f32.mrf.mxu0  ;;  %v1695_v9 = vpop.f32.mrf.mxu1 }
 0x2a9   : > { %v2322_v1 = vadd.f32 %v1683_v45, %v977_v61  ;;  %v2324_v38 = vadd.f32 %v1695_v9, %v1017_v44 }
 0x2aa   : > { %v1115_v55 = vpop.f32.mrf.mxu0  ;;  %v1155_v23 = vpop.f32.mrf.mxu1 }
 0x2ab   : > { %v2326_v35 = vadd.f32 %v1115_v55, %v972_v47  ;;  %v2328_v12 = vadd.f32 %v1155_v23, %v1012_v16  ;;  %v1198_v11 = vsel %vm1194_vm2, %v2322_v1, 0.0  ;;  %v1222_v8 = vsel %vm1194_vm2, %v2324_v38, 0.0  ;;  %v2404_v55 = vpop.permute.xlu0 %1405 }
 0x2ac   : > { %v1698_v37 = vpop.f32.mrf.mxu1  ;;  %1199 = vadd.xlane.f32.xlu0 %v1198_v11  ;;  %v1686_v52 = vpop.f32.mrf.mxu0  ;;  %1223 = vadd.xlane.f32.xlu1 %v1222_v8 }
 0x2ad   : > { %v2334_v31 = vadd.f32 %v1686_v52, %v987_v2  ;;  %v1219_v5 = vsel %vm1194_vm2, %v2328_v12, 0.0  ;;  %v1195_v32 = vsel %vm1194_vm2, %v2326_v35, 0.0  ;;  %v2342_v58 = vadd.f32 %v1698_v37, %v1027_v40 }
 0x2ae   : > { %v1125_v28 = vpop.f32.mrf.mxu0  ;;  %v1165_v39 = vpop.f32.mrf.mxu1 }
 0x2af   : > { %v2336_v27 = vadd.f32 %v1125_v28, %v982_v62  ;;  %v2344_v59 = vadd.f32 %v1165_v39, %v1022_v41  ;;  %v1204_v49 = vsel %vm1194_vm2, %v2334_v31, 0.0  ;;  %v1228_v21 = vsel %vm1194_vm2, %v2342_v58, 0.0  ;;  %v2408_v11 = vpop.permute.xlu0 %1441 }
 0x2b0   : > { %1220 = vadd.xlane.f32.xlu0 %v1219_v5  ;;  %v1689_v17 = vpop.f32.mrf.mxu0  ;;  %1196 = vadd.xlane.f32.xlu1 %v1195_v32  ;;  %v1701_v14 = vpop.f32.mrf.mxu1 }
 0x2b1   : > { %v1201_v33 = vsel %vm1194_vm2, %v2336_v27, 0.0  ;;  %v2350_v15 = vadd.f32 %v1689_v17, %v997_v3  ;;  %v1225_v24 = vsel %vm1194_vm2, %v2344_v59, 0.0  ;;  %v2358_v10 = vadd.f32 %v1701_v14, %v1037_v54  ;;  %v2386_v3 = vpop.permute.xlu1 %1409 }
 0x2b2   : > { %v1135_v46 = vpop.f32.mrf.mxu0  ;;  %v1175_v53 = vpop.f32.mrf.mxu1 }
 0x2b3   : > { %v2352_v20 = vadd.f32 %v1135_v46, %v992_v43  ;;  %v2360_v22 = vadd.f32 %v1175_v53, %v1032_v36  ;;  %v1210_v25 = vsel %vm1194_vm2, %v2350_v15, 0.0  ;;  %v1234_v60 = vsel %vm1194_vm2, %v2358_v10, 0.0 }
 0x2b4   : > { %1202 = vadd.xlane.f32.xlu0 %v1201_v33  ;;  %1205 = vadd.xlane.f32.xlu1 %v1204_v49  ;;  %v1692_v48 = vpop.f32.mrf.mxu0  ;;  %v1704_v50 = vpop.f32.mrf.mxu1 }
 0x2b5   : > { %v1207_v34 = vsel %vm1194_vm2, %v2352_v20, 0.0  ;;  %v2366_v18 = vadd.f32 %v1692_v48, %v1007_v42  ;;  %v1231_v63 = vsel %vm1194_vm2, %v2360_v22, 0.0  ;;  %v2374_v0 = vadd.f32 %v1704_v50, %v1047_v30 }
 0x2b6   : > { %v1145_v7 = vpop.f32.mrf.mxu0  ;;  %v1185_v57 = vpop.f32.mrf.mxu1 }
 0x2b7   : > { %v2368_v51 = vadd.f32 %v1145_v7, %v1002_v56  ;;  %v2376_v4 = vadd.f32 %v1185_v57, %v1042_v6  ;;  %v1216_v62 = vsel %vm1194_vm2, %v2366_v18, 0.0  ;;  %v1240_v43 = vsel %vm1194_vm2, %v2374_v0, 0.0  ;;  %v2388_v56 = vpop.permute.xlu1 %1413 }
 0x2b8   : > { %1226 = vadd.xlane.f32.xlu0 %v1225_v24  ;;  %1229 = vadd.xlane.f32.xlu1 %v1228_v21 }
 0x2b9   : > { %v1213_v61 = vsel %vm1194_vm2, %v2368_v51, 0.0  ;;  %v1237_v2 = vsel %vm1194_vm2, %v2376_v4, 0.0 }
 0x2bb   : > { %v2390_v47 = vpop.permute.xlu1 %1417 }
 0x2bc   : > { %1208 = vadd.xlane.f32.xlu0 %v1207_v34  ;;  %1211 = vadd.xlane.f32.xlu1 %v1210_v25 }
 0x2bf   : > { %v2394_v42 = vpop.permute.xlu1 %1421 }
 0x2c0   : > { %1232 = vadd.xlane.f32.xlu0 %v1231_v63  ;;  %1235 = vadd.xlane.f32.xlu1 %v1234_v60 }
 0x2c3   : > { %v2396_v44 = vpop.permute.xlu1 %1425 }
 0x2c4   : > { %1214 = vadd.xlane.f32.xlu0 %v1213_v61  ;;  %1217 = vadd.xlane.f32.xlu1 %v1216_v62 }
 0x2c7   : > { %v2398_v45 = vpop.permute.xlu1 %1429 }
 0x2c8   : > { %1238 = vadd.xlane.f32.xlu0 %v1237_v2  ;;  %1241 = vadd.xlane.f32.xlu1 %v1240_v43 }
 0x2cb   : > { %v2400_v9 = vpop.permute.xlu1 %1433 }
 0x2cf   : > { %v2402_v16 = vpop.permute.xlu1 %1437 }
 0x2d3   : > { %v2406_v23 = vpop.permute.xlu1 %1445 }
 0x2d7   : > { %v2410_v8 = vpop.permute.xlu1 %1453 }
 0x2d9   : > { %1537 = vperm.xlu1 %1762, %v2182_v26   ;;  %v2412_v26 = vpop.permute.xlu0 %1449 }
 0x2dd   : > { %v2418_v52 = vpop.permute.xlu0 %1457 }
 0x2de   : > { %1533 = vperm.xlu0 %1763, %v2214_v13   ;;  %v2414_v13 = vpop.permute.xlu1 %1461 }
 0x2df   : > { %2668 = vst [vmem:[#allocation6_spill] sm:$0xff] %v2414_v13 }
 0x2e1   : > { %v2422_v5 = vpop.permute.xlu0 %1465 }
 0x2e2   : > { %v2416_v37 = vpop.permute.xlu1 %1485 }
 0x2e5   : > { %v2426_v39 = vpop.permute.xlu0 %1489 }
 0x2e6   : > { %v2420_v28 = vpop.permute.xlu1 %1493 }
 0x2e9   : > { %v2430_v41 = vpop.permute.xlu0 %1501 }
 0x2ea   : > { %v2424_v32 = vpop.permute.xlu1 %1497 }
 0x2ed   : > { %v2434_v33 = vpop.permute.xlu0 %1509 }
 0x2ee   : > { %v2428_v17 = vpop.permute.xlu1 %1505 }
 0x2f1   : > { %v2438_v14 = vpop.permute.xlu0 %1517 }
 0x2f2   : > { %v2432_v40 = vpop.permute.xlu1 %1513 }
 0x2f5   : > { %v2442_v24 = vpop.permute.xlu0 %1525 }
 0x2f6   : > { %v2436_v49 = vpop.permute.xlu1 %1521 }
 0x2fa   : > { %v2440_v46 = vpop.permute.xlu1 %1529 }
 0x335   : > { %v1224_v21 = vpop.xlane.xlu1 %1223  ;;  %v1200_v53 = vpop.xlane.xlu0 %1199 }
 0x336   : > { %v1253_v48 = vmul.f32 0.5, %v1224_v21  ;;  %v1245_v36 = vmul.f32 0.5, %v1200_v53 }
 0x338   : > { %v2445_v54 = vsub.f32 %v2324_v38, %v1253_v48  ;;  %v2448_v34 = vsub.f32 %v2322_v1, %v1245_v36 }
 0x339   : > { %v1197_v25 = vpop.xlane.xlu1 %1196  ;;  %v1221_v50 = vpop.xlane.xlu0 %1220 }
 0x33a   : > { %v1244_v7 = vmul.f32 0.5, %v1197_v25  ;;  %v1252_v63 = vmul.f32 0.5, %v1221_v50  ;;  %v1277_v60 = vmul.f32 %v2448_v34, %v2448_v34  ;;  %v1285_v38 = vmul.f32 %v2445_v54, %v2445_v54 }
 0x33c   : > { %v2453_v57 = vsub.f32 %v2326_v35, %v1244_v7  ;;  %v2456_v6 = vsub.f32 %v2328_v12, %v1252_v63  ;;  %v1295_v30 = vsel %vm1194_vm2, %v1277_v60, 0.0  ;;  %v1319_v48 = vsel %vm1194_vm2, %v1285_v38, 0.0 }
 0x33d   : > { %v1206_v1 = vpop.xlane.xlu1 %1205  ;;  %1296 = vadd.xlane.f32.xlu1 %v1295_v30  ;;  %v1203_v61 = vpop.xlane.xlu0 %1202 }
 0x33e   : > { %v1247_v62 = vmul.f32 0.5, %v1206_v1  ;;  %v1246_v2 = vmul.f32 0.5, %v1203_v61  ;;  %v1276_v43 = vmul.f32 %v2453_v57, %v2453_v57  ;;  %v1284_v35 = vmul.f32 %v2456_v6, %v2456_v6 }
 0x340   : > { %v2466_v21 = vsub.f32 %v2334_v31, %v1247_v62  ;;  %v2469_v12 = vsub.f32 %v2336_v27, %v1246_v2  ;;  %v1292_v53 = vsel %vm1194_vm2, %v1276_v43, 0.0  ;;  %v1316_v60 = vsel %vm1194_vm2, %v1284_v35, 0.0 }
 0x341   : > { %1293 = vadd.xlane.f32.xlu0 %v1292_v53  ;;  %v1230_v36 = vpop.xlane.xlu1 %1229  ;;  %1320 = vadd.xlane.f32.xlu1 %v1319_v48  ;;  %v1227_v25 = vpop.xlane.xlu0 %1226 }
 0x342   : > { %v1255_v50 = vmul.f32 0.5, %v1230_v36  ;;  %v1254_v7 = vmul.f32 0.5, %v1227_v25  ;;  %v1279_v63 = vmul.f32 %v2466_v21, %v2466_v21  ;;  %v1278_v38 = vmul.f32 %v2469_v12, %v2469_v12 }
 0x344   : > { %v2477_v31 = vsub.f32 %v2342_v58, %v1255_v50  ;;  %v2480_v27 = vsub.f32 %v2344_v59, %v1254_v7  ;;  %v1301_v30 = vsel %vm1194_vm2, %v1279_v63, 0.0  ;;  %v1298_v48 = vsel %vm1194_vm2, %v1278_v38, 0.0 }
 0x345   : > { %v1212_v1 = vpop.xlane.xlu1 %1211  ;;  %1302 = vadd.xlane.f32.xlu1 %v1301_v30  ;;  %1317 = vadd.xlane.f32.xlu0 %v1316_v60  ;;  %v1209_v61 = vpop.xlane.xlu0 %1208 }
 0x346   : > { %v1249_v62 = vmul.f32 0.5, %v1212_v1  ;;  %v1248_v2 = vmul.f32 0.5, %v1209_v61  ;;  %v1287_v43 = vmul.f32 %v2477_v31, %v2477_v31  ;;  %v1286_v58 = vmul.f32 %v2480_v27, %v2480_v27 }
 0x348   : > { %v2490_v59 = vsub.f32 %v2350_v15, %v1249_v62  ;;  %v2493_v35 = vsub.f32 %v2352_v20, %v1248_v2  ;;  %v1325_v53 = vsel %vm1194_vm2, %v1287_v43, 0.0  ;;  %v1322_v60 = vsel %vm1194_vm2, %v1286_v58, 0.0 }
 0x349   : > { %v1236_v36 = vpop.xlane.xlu1 %1235  ;;  %1326 = vadd.xlane.f32.xlu1 %v1325_v53  ;;  %1299 = vadd.xlane.f32.xlu0 %v1298_v48  ;;  %v1233_v25 = vpop.xlane.xlu0 %1232 }
 0x34a   : > { %v1257_v50 = vmul.f32 0.5, %v1236_v36  ;;  %v1256_v7 = vmul.f32 0.5, %v1233_v25  ;;  %v1281_v63 = vmul.f32 %v2490_v59, %v2490_v59  ;;  %v1280_v38 = vmul.f32 %v2493_v35, %v2493_v35 }
 0x34c   : > { %v2501_v15 = vsub.f32 %v2358_v10, %v1257_v50  ;;  %v2504_v20 = vsub.f32 %v2360_v22, %v1256_v7  ;;  %v1307_v30 = vsel %vm1194_vm2, %v1281_v63, 0.0  ;;  %v1304_v48 = vsel %vm1194_vm2, %v1280_v38, 0.0 }
 0x34d   : > { %v1218_v1 = vpop.xlane.xlu1 %1217  ;;  %1308 = vadd.xlane.f32.xlu1 %v1307_v30  ;;  %1323 = vadd.xlane.f32.xlu0 %v1322_v60  ;;  %v1215_v61 = vpop.xlane.xlu0 %1214 }
 0x34e   : > { %v1251_v62 = vmul.f32 0.5, %v1218_v1  ;;  %v1250_v2 = vmul.f32 0.5, %v1215_v61  ;;  %v1289_v43 = vmul.f32 %v2501_v15, %v2501_v15  ;;  %v1288_v10 = vmul.f32 %v2504_v20, %v2504_v20 }
 0x350   : > { %v2514_v22 = vsub.f32 %v2366_v18, %v1251_v62  ;;  %v2517_v58 = vsub.f32 %v2368_v51, %v1250_v2  ;;  %v1331_v53 = vsel %vm1194_vm2, %v1289_v43, 0.0  ;;  %v1328_v60 = vsel %vm1194_vm2, %v1288_v10, 0.0 }
 0x351   : > { %v1242_v36 = vpop.xlane.xlu1 %1241  ;;  %1332 = vadd.xlane.f32.xlu1 %v1331_v53  ;;  %1305 = vadd.xlane.f32.xlu0 %v1304_v48  ;;  %v1239_v25 = vpop.xlane.xlu0 %1238 }
 0x352   : > { %v1259_v50 = vmul.f32 0.5, %v1242_v36  ;;  %v1258_v7 = vmul.f32 0.5, %v1239_v25  ;;  %v1283_v63 = vmul.f32 %v2514_v22, %v2514_v22  ;;  %v1282_v38 = vmul.f32 %v2517_v58, %v2517_v58 }
 0x354   : > { %v2525_v18 = vsub.f32 %v2374_v0, %v1259_v50  ;;  %v2528_v51 = vsub.f32 %v2376_v4, %v1258_v7  ;;  %v1313_v30 = vsel %vm1194_vm2, %v1283_v63, 0.0  ;;  %v1310_v62 = vsel %vm1194_vm2, %v1282_v38, 0.0 }
 0x355   : > { %1314 = vadd.xlane.f32.xlu1 %v1313_v30  ;;  %1329 = vadd.xlane.f32.xlu0 %v1328_v60  ;;  %v2542_v2 = vpop.permute.xlu1 %1537 }
 0x356   : > { %v1291_v1 = vmul.f32 %v2525_v18, %v2525_v18  ;;  %v1290_v0 = vmul.f32 %v2528_v51, %v2528_v51 }
 0x358   : > { %v1337_v61 = vsel %vm1194_vm2, %v1291_v1, 0.0  ;;  %v1334_v4 = vsel %vm1194_vm2, %v1290_v0, 0.0 }
 0x359   : > { %1338 = vadd.xlane.f32.xlu1 %v1337_v61  ;;  %1311 = vadd.xlane.f32.xlu0 %v1310_v62  ;;  %v2544_v43 = vpop.permute.xlu0 %1533 }
 0x35d   : > { %1335 = vadd.xlane.f32.xlu0 %v1334_v4 }
 0x36a   : > { %1545 = vperm.xlu1 %1762, %v2194_v19  }
 0x373   : > { %1541 = vperm.xlu0 %1763, %v2221_v29  }
 0x3c6   : > { %v1297_v10 = vpop.xlane.xlu1 %1296 }
 0x3c7   : > { %v1341_v53 = vmul.f32 0.5, %v1297_v10 }
 0x3c9   : > { %v1357_v48 = vadd.f32 1e-05, %v1341_v53 }
 0x3ca   : > { %v1321_v36 = vpop.xlane.xlu1 %1320  ;;  %v1294_v25 = vpop.xlane.xlu0 %1293 }
 0x3cb   : > { %1764 = vrsqrt.f32 %v1357_v48  ;;  %v1349_v50 = vmul.f32 0.5, %v1321_v36  ;;  %v1340_v7 = vmul.f32 0.5, %v1294_v25 }
 0x3cd   : > { %v1365_v63 = vadd.f32 1e-05, %v1349_v50  ;;  %v1356_v60 = vadd.f32 1e-05, %v1340_v7 }
 0x3ce   : > { %v1303_v30 = vpop.xlane.xlu1 %1302  ;;  %v1318_v38 = vpop.xlane.xlu0 %1317 }
 0x3cf   : > { %1766 = vrsqrt.f32 %v1365_v63  ;;  %v1343_v19 = vmul.f32 0.5, %v1303_v30  ;;  %v1348_v1 = vmul.f32 0.5, %v1318_v38 }
 0x3d0   : > { %1768 = vrsqrt.f32 %v1356_v60 }
 0x3d1   : > { %v1359_v29 = vadd.f32 1e-05, %v1343_v19  ;;  %v1364_v61 = vadd.f32 1e-05, %v1348_v1 }
 0x3d2   : > { %v1327_v62 = vpop.xlane.xlu1 %1326  ;;  %v1300_v0 = vpop.xlane.xlu0 %1299 }
 0x3d3   : > { %1770 = vrsqrt.f32 %v1359_v29  ;;  %v1351_v4 = vmul.f32 0.5, %v1327_v62  ;;  %v1342_v10 = vmul.f32 0.5, %v1300_v0 }
 0x3d4   : > { %1772 = vrsqrt.f32 %v1364_v61 }
 0x3d5   : > { %v1367_v53 = vadd.f32 1e-05, %v1351_v4  ;;  %v1358_v48 = vadd.f32 1e-05, %v1342_v10 }
 0x3d6   : > { %v1309_v36 = vpop.xlane.xlu1 %1308  ;;  %v1324_v25 = vpop.xlane.xlu0 %1323 }
 0x3d7   : > { %1774 = vrsqrt.f32 %v1367_v53  ;;  %v1345_v50 = vmul.f32 0.5, %v1309_v36  ;;  %v1350_v7 = vmul.f32 0.5, %v1324_v25 }
 0x3d8   : > { %v1765_v13 = vpop.eup %1764  ;;  %1776 = vrsqrt.f32 %v1358_v48 }
 0x3d9   : > { %v1389_v63 = vmul.f32 %v1765_v13, %v2448_v34  ;;  %v1361_v60 = vadd.f32 1e-05, %v1345_v50  ;;  %v1366_v30 = vadd.f32 1e-05, %v1350_v7 }
 0x3da   : > { %v1333_v38 = vpop.xlane.xlu1 %1332  ;;  %v1306_v19 = vpop.xlane.xlu0 %1305 }
 0x3db   : > { %v1469_v1 = vmul.f32 %v2386_v3, %v1389_v63  ;;  %1778 = vrsqrt.f32 %v1361_v60  ;;  %v1353_v29 = vmul.f32 0.5, %v1333_v38  ;;  %v1344_v61 = vmul.f32 0.5, %v1306_v19 }
 0x3dc   : > { %v1767_v62 = vpop.eup %1766  ;;  %1780 = vrsqrt.f32 %v1366_v30 }
 0x3dd   : > { %v1769_v0 = vpop.eup %1768  ;;  %v1549_v4 = vadd.f32 %v2426_v39, %v1469_v1  ;;  %v1397_v10 = vmul.f32 %v1767_v62, %v2445_v54  ;;  %v1369_v53 = vadd.f32 1e-05, %v1353_v29  ;;  %v1360_v48 = vadd.f32 1e-05, %v1344_v61 }
 0x3de   : > { %v1388_v13 = vmul.f32 %v1769_v0, %v2453_v57  ;;  %v1315_v34 = vpop.xlane.xlu1 %1314  ;;  %v1330_v36 = vpop.xlane.xlu0 %1329 }
 0x3df   : > { %1565 = vst.msk [vmem:[%s2663_s4 + $0x8] sm:$0xff] %vm1194_vm2, %v1549_v4  ;;  %v1477_v3 = vmul.f32 %v2408_v11, %v1397_v10  ;;  %1782 = vrsqrt.f32 %v1369_v53  ;;  %v1347_v25 = vmul.f32 0.5, %v1315_v34  ;;  %v1352_v50 = vmul.f32 0.5, %v1330_v36 }
 0x3e0   : > { %v1771_v7 = vpop.eup %1770  ;;  %v1468_v39 = vmul.f32 %v2404_v55, %v1388_v13  ;;  %1784 = vrsqrt.f32 %v1360_v48 }
 0x3e1   : > { %v1773_v54 = vpop.eup %1772  ;;  %v1557_v63 = vadd.f32 %v2436_v49, %v1477_v3  ;;  %v1391_v57 = vmul.f32 %v1771_v7, %v2466_v21  ;;  %v1363_v60 = vadd.f32 1e-05, %v1347_v25  ;;  %v1368_v30 = vadd.f32 1e-05, %v1352_v50 }
 0x3e2   : > { %v1548_v38 = vadd.f32 %v2416_v37, %v1468_v39  ;;  %v1396_v19 = vmul.f32 %v1773_v54, %v2456_v6  ;;  %v1339_v1 = vpop.xlane.xlu1 %1338  ;;  %v1312_v11 = vpop.xlane.xlu0 %1311 }
 0x3e3   : > { %1573 = vst.msk [vmem:[%s2663_s4 + $0x48] sm:$0xff] %vm1194_vm2, %v1557_v63  ;;  %v1471_v55 = vmul.f32 %v2390_v47, %v1391_v57  ;;  %1786 = vrsqrt.f32 %v1363_v60  ;;  %v1355_v29 = vmul.f32 0.5, %v1339_v1  ;;  %v1346_v49 = vmul.f32 0.5, %v1312_v11 }
 0x3e4   : > { %v1775_v61 = vpop.eup %1774  ;;  %1564 = vst.msk [vmem:[%s2663_s4] sm:$0xff] %vm1194_vm2, %v1548_v38  ;;  %v1476_v37 = vmul.f32 %v2402_v16, %v1396_v19  ;;  %1788 = vrsqrt.f32 %v1368_v30 }
 0x3e5   : > { %v1777_v6 = vpop.eup %1776  ;;  %v1551_v21 = vadd.f32 %v2424_v32, %v1471_v55  ;;  %v1399_v62 = vmul.f32 %v1775_v61, %v2477_v31  ;;  %v1371_v0 = vadd.f32 1e-05, %v1355_v29  ;;  %v1362_v4 = vadd.f32 1e-05, %v1346_v49 }
 0x3e6   : > { %v1556_v47 = vadd.f32 %v2438_v14, %v1476_v37  ;;  %v1390_v10 = vmul.f32 %v1777_v6, %v2469_v12  ;;  %v1336_v53 = vpop.xlane.xlu0 %1335 }
 0x3e7   : > { %1567 = vst.msk [vmem:[%s2663_s4 + $0x18] sm:$0xff] %vm1194_vm2, %v1551_v21  ;;  %v1479_v16 = vmul.f32 %v2412_v26, %v1399_v62  ;;  %1790 = vrsqrt.f32 %v1371_v0  ;;  %v1354_v48 = vmul.f32 0.5, %v1336_v53 }
 0x3e8   : > { %v1779_v13 = vpop.eup %1778  ;;  %1572 = vst.msk [vmem:[%s2663_s4 + $0x40] sm:$0xff] %vm1194_vm2, %v1556_v47  ;;  %v1470_v32 = vmul.f32 %v2388_v56, %v1390_v10  ;;  %1792 = vrsqrt.f32 %v1362_v4 }
 0x3e9   : > { %v1781_v14 = vpop.eup %1780  ;;  %v1559_v12 = vadd.f32 %v2440_v46, %v1479_v16  ;;  %v1393_v31 = vmul.f32 %v1779_v13, %v2490_v59  ;;  %v1370_v34 = vadd.f32 1e-05, %v1354_v48 }
 0x3ea   : > { %v1550_v36 = vadd.f32 %v2420_v28, %v1470_v32  ;;  %v1398_v26 = vmul.f32 %v1781_v14, %v2480_v27 }
 0x3eb   : > { %1575 = vst.msk [vmem:[%s2663_s4 + $0x58] sm:$0xff] %vm1194_vm2, %v1559_v12  ;;  %v1473_v3 = vmul.f32 %v2396_v44, %v1393_v31  ;;  %1794 = vrsqrt.f32 %v1370_v34 }
 0x3ec   : > { %v1783_v56 = vpop.eup %1782  ;;  %1566 = vst.msk [vmem:[%s2663_s4 + $0x10] sm:$0xff] %vm1194_vm2, %v1550_v36  ;;  %v1478_v46 = vmul.f32 %v2406_v23, %v1398_v26 }
 0x3ed   : > { %v1785_v59 = vpop.eup %1784  ;;  %v1553_v28 = vadd.f32 %v2428_v17, %v1473_v3  ;;  %v1401_v27 = vmul.f32 %v1783_v56, %v2501_v15 }
 0x3ee   : > { %v1558_v25 = vadd.f32 %v2442_v24, %v1478_v46  ;;  %v1392_v50 = vmul.f32 %v1785_v59, %v2493_v35  ;;  %v1542_v30 = vpop.permute.xlu0 %1541 }
 0x3ef   : > { %1569 = vst.msk [vmem:[%s2663_s4 + $0x28] sm:$0xff] %vm1194_vm2, %v1553_v28  ;;  %v1481_v44 = vmul.f32 %v2418_v52, %v1401_v27 }
 0x3f0   : > { %v1787_v7 = vpop.eup %1786  ;;  %1574 = vst.msk [vmem:[%s2663_s4 + $0x50] sm:$0xff] %vm1194_vm2, %v1558_v25  ;;  %v1472_v23 = vmul.f32 %v2394_v42, %v1392_v50 }
 0x3f1   : > { %v1789_v17 = vpop.eup %1788  ;;  %v1561_v24 = vadd.f32 %v2542_v2, %v1481_v44  ;;  %v1395_v35 = vmul.f32 %v1787_v7, %v2514_v22 }
 0x3f2   : > { %v1552_v15 = vadd.f32 %v2430_v41, %v1472_v23  ;;  %v1400_v39 = vmul.f32 %v1789_v17, %v2504_v20 }
 0x3f3   : > { %1577 = vst.msk [vmem:[%s2663_s4 + $0x68] sm:$0xff] %vm1194_vm2, %v1561_v24  ;;  %v1475_v52 = vmul.f32 %v2400_v9, %v1395_v35 }
 0x3f4   : > { %v1791_v54 = vpop.eup %1790  ;;  %1568 = vst.msk [vmem:[%s2663_s4 + $0x20] sm:$0xff] %vm1194_vm2, %v1552_v15  ;;  %v1480_v42 = vmul.f32 %v2410_v8, %v1400_v39 }
 0x3f5   : > { %v1793_v22 = vpop.eup %1792  ;;  %v1555_v41 = vadd.f32 %v2432_v40, %v1475_v52  ;;  %v1403_v20 = vmul.f32 %v1791_v54, %v2525_v18  ;;  %v1546_v40 = vpop.permute.xlu1 %1545 }
 0x3f6   : > { %v1560_v2 = vadd.f32 %v2544_v43, %v1480_v42  ;;  %v1394_v63 = vmul.f32 %v1793_v22, %v2517_v58 }
 0x3f7   : > { %1571 = vst.msk [vmem:[%s2663_s4 + $0x38] sm:$0xff] %vm1194_vm2, %v1555_v41  ;;  %v1483_v9 = vmul.f32 %v2422_v5, %v1403_v20  ;;  %v2669_v5 = vld [vmem:[#allocation6_spill] sm:$0xff] }
 0x3f8   : > { %v1795_v57 = vpop.eup %1794  ;;  %1576 = vst.msk [vmem:[%s2663_s4 + $0x60] sm:$0xff] %vm1194_vm2, %v1560_v2  ;;  %v1474_v8 = vmul.f32 %v2398_v45, %v1394_v63 }
 0x3f9   : > { %v1563_v18 = vadd.f32 %v1546_v40, %v1483_v9  ;;  %v1402_v43 = vmul.f32 %v1795_v57, %v2528_v51 }
 0x3fa   : > { %v1554_v58 = vadd.f32 %v2434_v33, %v1474_v8 }
 0x3fb   : > { %1579 = vst.msk [vmem:[%s2663_s4 + $0x78] sm:$0xff] %vm1194_vm2, %v1563_v18  ;;  %v1482_v60 = vmul.f32 %v2669_v5, %v1402_v43 }
 0x3fc   : > { %1570 = vst.msk [vmem:[%s2663_s4 + $0x30] sm:$0xff] %vm1194_vm2, %v1554_v58 }
 0x3fd   : > { %v1562_v45 = vadd.f32 %v1542_v30, %v1482_v60 }
 0x3ff   : > { %1578 = vst.msk [vmem:[%s2663_s4 + $0x70] sm:$0xff] %vm1194_vm2, %v1562_v45 }
 0x400 PF: > { %s14_s15 = sadd.s32 1, %s1802_s15  }
 0x401   : > { %p11_p6 = scmp.ge.s32.totalorder %s14_s15, 4  }
 0x403   :  { %13 = sbr.rel (!%p11_p6) target bundleno = 1 (0x1), region = 71 }

</bundles_post_ra>
